<compile_context>
chip_gen: v5e
topology: v5e:2x2
jax: 0.10.0
libtpu: 0.0.40
codegen_flags: <defaults>
</compile_context>

<pallas_src>
import functools

import jax
import jax.numpy as jnp
from jax import lax
from jax.experimental import pallas as pl
from jax.experimental.pallas import tpu as pltpu

Z1 = 100
Z2 = 100

HPAD = 128            # padded hidden width (Z1 == Z2 == 100 -> 128 lanes)
WIDTH = 2 * HPAD      # packed trunk width: [actor half | critic half]


def _pad16(n):
    return max(16, -(-n // 16) * 16)


def _relu6(x):
    return jnp.clip(x, 0.0, 6.0)


def _softplus(x):
    # numerically-stable softplus: log1p(exp(-|x|)) + max(x, 0)
    return jnp.log1p(jnp.exp(-jnp.abs(x))) + jnp.maximum(x, 0.0)


def a3c_fused_kernel(x_ref, w_ref, b_ref, out_ref, *, a_dim, split_layer2):
    cdt = w_ref.dtype                                    # compute dtype (bf16 or f32)
    # Full f32 MXU precision when the weight slab is f32; native bf16 otherwise.
    prec = lax.Precision.HIGHEST if w_ref.dtype == jnp.float32 else None

    s_pad = x_ref.shape[1]                               # layer-1 fan-in rows in the slab
    r2 = s_pad
    r3 = s_pad + 2 * HPAD

    x = x_ref[...].astype(cdt)                           # [TB, s_pad]

    # Static, tile-aligned slices of the packed weight/bias slabs (zero-cost views).
    w1 = w_ref[0:s_pad, :]                               # [s_pad, 256]  (wa1 | wc1)
    b1 = b_ref[0:1, :]
    b3 = b_ref[2:3, 0:HPAD]                              # heads: 128 lanes only

    # layer 1: actor + critic trunks share one MXU pass -> [TB, 256] f32
    h1 = _relu6(jnp.dot(x, w1, precision=prec,
                        preferred_element_type=jnp.float32) + b1)

    if split_layer2:
        # v5e (4x128^2 MXU): skip the two all-zero off-diagonal 128^2 tiles of the
        # block-diagonal layer-2 weight by running actor / critic halves separately.
        w2a = w_ref[r2:r2 + HPAD, 0:HPAD]
        w2c = w_ref[r2 + HPAD:r2 + 2 * HPAD, HPAD:WIDTH]
        w3a = w_ref[r3:r3 + HPAD, 0:HPAD]
        w3c = w_ref[r3 + HPAD:r3 + 2 * HPAD, 0:HPAD]
        h2a = _relu6(jnp.dot(h1[:, 0:HPAD].astype(cdt), w2a, precision=prec,
                             preferred_element_type=jnp.float32)
                     + b_ref[1:2, 0:HPAD])
        h2c = _relu6(jnp.dot(h1[:, HPAD:WIDTH].astype(cdt), w2c, precision=prec,
                             preferred_element_type=jnp.float32)
                     + b_ref[1:2, HPAD:WIDTH])
        raw = (jnp.dot(h2a.astype(cdt), w3a, precision=prec,
                       preferred_element_type=jnp.float32)
               + jnp.dot(h2c.astype(cdt), w3c, precision=prec,
                         preferred_element_type=jnp.float32)
               + b3)
    else:
        # v6e/v7x (2x256^2 MXU): one fused block-diagonal dot per layer.
        w2 = w_ref[r2:r2 + 2 * HPAD, :]                  # [256, 256] blockdiag(wa2, wc2)
        w3 = w_ref[r3:r3 + 2 * HPAD, 0:HPAD]             # [256, 128] heads (mu|sigma|v)
        b2 = b_ref[1:2, :]
        h2 = _relu6(jnp.dot(h1.astype(cdt), w2, precision=prec,
                            preferred_element_type=jnp.float32) + b2)
        raw = jnp.dot(h2.astype(cdt), w3, precision=prec,
                      preferred_element_type=jnp.float32) + b3

    # Per-column activation over the 128-lane head slab only:
    #   cols [0, a_dim)       -> 5 * tanh          (mu)
    #   cols [a_dim, 2*a_dim) -> softplus + 1e-3   (sigma)
    #   col  2*a_dim          -> identity          (value); padded cols stay 0.
    col = lax.broadcasted_iota(jnp.int32, raw.shape, 1)
    mu = 5.0 * jnp.tanh(raw)
    sigma = _softplus(raw) + 0.001
    out = jnp.where(col < a_dim, mu, jnp.where(col < 2 * a_dim, sigma, raw))

    out_ref[...] = out.astype(out_ref.dtype)             # lane-dense [TB, 128] store


def pack_params(p, s_dim, a_dim, dtype=jnp.bfloat16):
    """Pack the 7 Linear layers (weights stored [in, out]) into one weight slab
    [s_pad + 4*HPAD, 256] and one bias slab [8, 256] (biases always f32)."""
    s_pad = _pad16(s_dim)
    assert Z1 <= HPAD and Z2 <= HPAD
    assert 2 * a_dim + 1 <= HPAD, "mu|sigma|v heads must fit in 128 lanes"

    w = jnp.zeros((s_pad + 4 * HPAD, WIDTH), jnp.float32)
    # layer 1: [wa1 | wc1]
    w = w.at[:s_dim, :Z1].set(p["wa1"])
    w = w.at[:s_dim, HPAD:HPAD + Z1].set(p["wc1"])
    # layer 2: block-diagonal(wa2, wc2)
    r2 = s_pad
    w = w.at[r2:r2 + Z1, :Z2].set(p["wa2"])
    w = w.at[r2 + HPAD:r2 + HPAD + Z1, HPAD:HPAD + Z2].set(p["wc2"])
    # heads (cols 0..127 only): actor rows -> (mu | sigma), critic rows -> v column
    r3 = s_pad + 2 * HPAD
    w = w.at[r3:r3 + Z2, :a_dim].set(p["wmu"])
    w = w.at[r3:r3 + Z2, a_dim:2 * a_dim].set(p["wsig"])
    w = w.at[r3 + HPAD:r3 + HPAD + Z2, 2 * a_dim:2 * a_dim + 1].set(p["wv"])

    b = jnp.zeros((8, WIDTH), jnp.float32)
    b = b.at[0, :Z1].set(p["ba1"][0]).at[0, HPAD:HPAD + Z1].set(p["bc1"][0])
    b = b.at[1, :Z2].set(p["ba2"][0]).at[1, HPAD:HPAD + Z2].set(p["bc2"][0])
    b = b.at[2, :a_dim].set(p["bmu"][0]).at[2, a_dim:2 * a_dim].set(p["bsig"][0])
    b = b.at[2, 2 * a_dim].set(p["bv"][0, 0])

    # NOTE: bf16 also quantizes the critic value head; pass dtype=float32 if value-loss
    # precision matters for training (the slab is VMEM-resident, the cost is negligible).
    return w.astype(dtype), b   # biases stay f32 (added after f32 accumulation)


def _is_v5e():
    try:
        kind = jax.devices()[0].device_kind.lower()
    except Exception:
        return False
    return ("v5e" in kind) or ("v5 lite" in kind) or ("v5lite" in kind)


def a3c_net_forward(x, w_packed, b_packed, *, a_dim, batch_tile=512, split_layer2=None):
    """x: [B, s_dim] f32.  w_packed/b_packed: from pack_params.
    Returns (mu [B,a_dim], sigma [B,a_dim], values [B,1]) in f32."""
    B, s_dim = x.shape
    s_pad = w_packed.shape[0] - 4 * HPAD      # layer-1 rows allotted in the slab
    assert s_dim <= s_pad
    assert 2 * a_dim + 1 <= HPAD

    if split_layer2 is None:                  # v5e (4x128^2 MXU): split blockdiag dot
        split_layer2 = _is_v5e()

    # Pad batch to >=8 sublanes; tile large batches over a "parallel" grid axis.
    b_pad = max(8, -(-B // 8) * 8)
    tb = batch_tile
    if b_pad >= 512:                          # ensure >=2 grid steps so v7x uses both TCs
        tb = min(tb, b_pad // 2)
    tb = min(tb, b_pad)
    tb = max(8, (tb // 8) * 8)
    b_pad = -(-b_pad // tb) * tb

    # x at near-natural width (f32): only s_pad lanes of input DMA per row, not 128.
    x_pad = jnp.zeros((b_pad, s_pad), jnp.float32).at[:B, :s_dim].set(x)

    out = pl.pallas_call(
        functools.partial(a3c_fused_kernel, a_dim=a_dim, split_layer2=split_layer2),
        out_shape=jax.ShapeDtypeStruct((b_pad, HPAD), jnp.float32),
        grid=(b_pad // tb,),
        in_specs=[
            pl.BlockSpec((tb, s_pad), lambda i: (i, 0)),
            # Constant index_map: the tiny weight/bias slabs stay resident in VMEM and
            # are not re-DMA'd per grid step.
            pl.BlockSpec(w_packed.shape, lambda i: (0, 0)),
            pl.BlockSpec(b_packed.shape, lambda i: (0, 0)),
        ],
        out_specs=pl.BlockSpec((tb, HPAD), lambda i: (i, 0)),
        compiler_params=pltpu.CompilerParams(
            dimension_semantics=("parallel",)),   # shards grid steps over both TCs on v7x
    )(x_pad, w_packed, b_packed)

    mu = out[:B, :a_dim]
    sigma = out[:B, a_dim:2 * a_dim]
    values = out[:B, 2 * a_dim:2 * a_dim + 1]
    return mu, sigma, values


def init_params(key, s_dim, a_dim):
    """Mimics set_init: weights ~ N(0, 0.1), zero biases. Weights stored [in, out]."""
    ks = jax.random.split(key, 7)

    def w(k, fan_in, fan_out):
        return (0.1 * jax.random.normal(k, (fan_in, fan_out))).astype(jnp.float32)

    def b(fan_out):
        return jnp.zeros((1, fan_out), dtype=jnp.float32)

    return {
        "wa1": w(ks[0], s_dim, Z1), "ba1": b(Z1),
        "wa2": w(ks[1], Z1, Z2),    "ba2": b(Z2),
        "wmu": w(ks[2], Z2, a_dim), "bmu": b(a_dim),
        "wsig": w(ks[3], Z2, a_dim), "bsig": b(a_dim),
        "wc1": w(ks[4], s_dim, Z1), "bc1": b(Z1),
        "wc2": w(ks[5], Z1, Z2),    "bc2": b(Z2),
        "wv":  w(ks[6], Z2, 1),     "bv": b(1),
    }


def reference_forward(x, p):
    """Pure-JAX f32 reference of the PyTorch forward (full-precision matmuls)."""
    hi = jax.lax.Precision.HIGHEST
    dot = lambda a, w: jnp.dot(a, w, precision=hi)
    relu6 = lambda v: jnp.clip(v, 0.0, 6.0)
    a1 = relu6(dot(x, p["wa1"]) + p["ba1"])
    a2 = relu6(dot(a1, p["wa2"]) + p["ba2"])
    mu = 5.0 * jnp.tanh(dot(a2, p["wmu"]) + p["bmu"])
    sigma = jax.nn.softplus(dot(a2, p["wsig"]) + p["bsig"]) + 0.001
    c1 = relu6(dot(x, p["wc1"]) + p["bc1"])
    c2 = relu6(dot(c1, p["wc2"]) + p["bc2"])
    values = dot(c2, p["wv"]) + p["bv"]
    return mu, sigma, values


if __name__ == "__main__":
    key = jax.random.PRNGKey(0)
    k_x, k_p, k_x2 = jax.random.split(key, 3)

    B, S_DIM, A_DIM = 2, 8, 4
    x = jax.random.normal(k_x, (B, S_DIM), dtype=jnp.float32)
    params = init_params(k_p, S_DIM, A_DIM)
    mu_r, sigma_r, values_r = reference_forward(x, params)

    fwd = jax.jit(a3c_net_forward,
                  static_argnames=("a_dim", "batch_tile", "split_layer2"))

    # 1) Strict correctness check with f32 packed weights (HIGHEST-precision MXU).
    w32, b32 = pack_params(params, S_DIM, A_DIM, dtype=jnp.float32)
    mu, sigma, values = jax.block_until_ready(fwd(x, w32, b32, a_dim=A_DIM))
    assert mu.shape == (B, A_DIM) and sigma.shape == (B, A_DIM) and values.shape == (B, 1)
    assert jnp.allclose(mu, mu_r, atol=1e-3, rtol=1e-3), "mu mismatch (f32)"
    assert jnp.allclose(sigma, sigma_r, atol=1e-3, rtol=1e-3), "sigma mismatch (f32)"
    assert jnp.allclose(values, values_r, atol=1e-3, rtol=1e-3), "values mismatch (f32)"

    # 2) Force the split-layer-2 (v5e) code path, f32 weights.
    mu_s, sigma_s, values_s = jax.block_until_ready(
        fwd(x, w32, b32, a_dim=A_DIM, split_layer2=True))
    assert jnp.allclose(mu_s, mu_r, atol=1e-3, rtol=1e-3), "mu mismatch (split)"
    assert jnp.allclose(sigma_s, sigma_r, atol=1e-3, rtol=1e-3), "sigma mismatch (split)"
    assert jnp.allclose(values_s, values_r, atol=1e-3, rtol=1e-3), "values mismatch (split)"

    # 3) Production path: bf16 weights (native MXU dtype on v6e/v7x), f32 accumulation.
    #    Loose tolerances: differences here are expected bf16 quantization, not wiring.
    wbf, bbf = pack_params(params, S_DIM, A_DIM, dtype=jnp.bfloat16)
    mu_b, sigma_b, values_b = jax.block_until_ready(fwd(x, wbf, bbf, a_dim=A_DIM))
    assert jnp.allclose(mu_b, mu_r, atol=1e-1, rtol=1e-1), "mu mismatch (bf16)"
    assert jnp.allclose(sigma_b, sigma_r, atol=1e-1, rtol=1e-1), "sigma mismatch (bf16)"
    assert jnp.allclose(values_b, values_r, atol=1e-1, rtol=1e-1), "values mismatch (bf16)"

    # 4) Batched path: many A3C worker states in one call (>=2 parallel grid steps).
    B2 = 512
    x2 = jax.random.normal(k_x2, (B2, S_DIM), dtype=jnp.float32)
    mu2, sigma2, values2 = jax.block_until_ready(fwd(x2, wbf, bbf, a_dim=A_DIM))
    mu2_r, sigma2_r, values2_r = reference_forward(x2, params)
    assert mu2.shape == (B2, A_DIM) and sigma2.shape == (B2, A_DIM) and values2.shape == (B2, 1)
    assert jnp.allclose(mu2, mu2_r, atol=1e-1, rtol=1e-1), "mu mismatch (batched)"
    assert jnp.allclose(sigma2, sigma2_r, atol=1e-1, rtol=1e-1), "sigma mismatch (batched)"
    assert jnp.allclose(values2, values2_r, atol=1e-1, rtol=1e-1), "values mismatch (batched)"

    print("KERNEL_OK")
</pallas_src>

<mosaic_0001>
module attributes {stable_mosaic.version = 11 : i64} {
  func.func @a3c_fused_kernel(%arg0: i32, %arg1: memref<8x16xf32, #tpu.memory_space<vmem>>, %arg2: memref<528x256xf32, #tpu.memory_space<vmem>>, %arg3: memref<8x256xf32, #tpu.memory_space<vmem>>, %arg4: memref<8x128xf32, #tpu.memory_space<vmem>>) attributes {dimension_semantics = [#tpu.dimension_semantics<parallel>], iteration_bounds = array<i64: 1>, scalar_prefetch = 0 : i64, scratch_operands = 0 : i64, tpu.core_type = #tpu.core_type<tc>, window_params = [{transform_indices = @transform_0, window_bounds = array<i64: 8, 16>}, {pipeline_mode = #tpu.pipeline_mode<synchronous>, transform_indices = @transform_1, window_bounds = array<i64: 528, 256>}, {pipeline_mode = #tpu.pipeline_mode<synchronous>, transform_indices = @transform_2, window_bounds = array<i64: 8, 256>}, {transform_indices = @transform_3, window_bounds = array<i64: 8, 128>}]} {
    %c0 = arith.constant 0 : index
    %c0_0 = arith.constant 0 : index
    %0 = vector.load %arg1[%c0, %c0_0] : memref<8x16xf32, #tpu.memory_space<vmem>>, vector<8x16xf32>
    %c0_1 = arith.constant 0 : index
    %c0_2 = arith.constant 0 : index
    %1 = vector.load %arg2[%c0_1, %c0_2] : memref<528x256xf32, #tpu.memory_space<vmem>>, vector<16x256xf32>
    %c0_3 = arith.constant 0 : index
    %c0_4 = arith.constant 0 : index
    %2 = vector.load %arg3[%c0_3, %c0_4] : memref<8x256xf32, #tpu.memory_space<vmem>>, vector<1x256xf32>
    %c2 = arith.constant 2 : index
    %c0_5 = arith.constant 0 : index
    %3 = vector.load %arg3[%c2, %c0_5] : memref<8x256xf32, #tpu.memory_space<vmem>>, vector<1x128xf32>
    %cst = arith.constant dense<0.000000e+00> : vector<8x256xf32>
    %4 = tpu.matmul %0, %1, %cst {dimension_numbers = #tpu.dot_dimension_numbers<[1], [0], [0], [1], [0, 0, 1, 1], [], []>, precision = #tpu.contract_precision<fp32>} : vector<8x16xf32>, vector<16x256xf32>, vector<8x256xf32> -> vector<8x256xf32>
    %5 = vector.broadcast %2 : vector<1x256xf32> to vector<8x256xf32>
    %6 = arith.addf %4, %5 : vector<8x256xf32>
    %cst_6 = arith.constant 0.000000e+00 : f32
    %cst_7 = arith.constant 6.000000e+00 : f32
    %7 = vector.broadcast %cst_6 : f32 to vector<8x256xf32>
    %8 = arith.maximumf %7, %6 : vector<8x256xf32>
    %9 = vector.broadcast %cst_7 : f32 to vector<8x256xf32>
    %10 = arith.minimumf %9, %8 : vector<8x256xf32>
    %c16 = arith.constant 16 : index
    %c0_8 = arith.constant 0 : index
    %11 = vector.load %arg2[%c16, %c0_8] : memref<528x256xf32, #tpu.memory_space<vmem>>, vector<256x256xf32>
    %c272 = arith.constant 272 : index
    %c0_9 = arith.constant 0 : index
    %12 = vector.load %arg2[%c272, %c0_9] : memref<528x256xf32, #tpu.memory_space<vmem>>, vector<256x128xf32>
    %c1 = arith.constant 1 : index
    %c0_10 = arith.constant 0 : index
    %13 = vector.load %arg3[%c1, %c0_10] : memref<8x256xf32, #tpu.memory_space<vmem>>, vector<1x256xf32>
    %cst_11 = arith.constant dense<0.000000e+00> : vector<8x256xf32>
    %14 = tpu.matmul %10, %11, %cst_11 {dimension_numbers = #tpu.dot_dimension_numbers<[1], [0], [0], [1], [0, 0, 1, 1], [], []>, precision = #tpu.contract_precision<fp32>} : vector<8x256xf32>, vector<256x256xf32>, vector<8x256xf32> -> vector<8x256xf32>
    %15 = vector.broadcast %13 : vector<1x256xf32> to vector<8x256xf32>
    %16 = arith.addf %14, %15 : vector<8x256xf32>
    %cst_12 = arith.constant 0.000000e+00 : f32
    %cst_13 = arith.constant 6.000000e+00 : f32
    %17 = vector.broadcast %cst_12 : f32 to vector<8x256xf32>
    %18 = arith.maximumf %17, %16 : vector<8x256xf32>
    %19 = vector.broadcast %cst_13 : f32 to vector<8x256xf32>
    %20 = arith.minimumf %19, %18 : vector<8x256xf32>
    %cst_14 = arith.constant dense<0.000000e+00> : vector<8x128xf32>
    %21 = tpu.matmul %20, %12, %cst_14 {dimension_numbers = #tpu.dot_dimension_numbers<[1], [0], [0], [1], [0, 0, 1, 1], [], []>, precision = #tpu.contract_precision<fp32>} : vector<8x256xf32>, vector<256x128xf32>, vector<8x128xf32> -> vector<8x128xf32>
    %22 = vector.broadcast %3 : vector<1x128xf32> to vector<8x128xf32>
    %23 = arith.addf %21, %22 : vector<8x128xf32>
    %24 = tpu.iota {dimensions = array<i32: 1>} : vector<8x128xi32>
    %25 = math.tanh %23 : vector<8x128xf32>
    %cst_15 = arith.constant 5.000000e+00 : f32
    %26 = vector.broadcast %cst_15 : f32 to vector<8x128xf32>
    %27 = arith.mulf %26, %25 : vector<8x128xf32>
    %28 = math.absf %23 : vector<8x128xf32>
    %cst_16 = arith.constant 0.000000e+00 : f32
    %29 = vector.broadcast %cst_16 : f32 to vector<8x128xf32>
    %30 = arith.subf %29, %28 : vector<8x128xf32>
    %31 = math.exp %30 : vector<8x128xf32>
    %32 = math.log1p %31 : vector<8x128xf32>
    %cst_17 = arith.constant 0.000000e+00 : f32
    %33 = vector.broadcast %cst_17 : f32 to vector<8x128xf32>
    %34 = arith.maximumf %23, %33 : vector<8x128xf32>
    %35 = arith.addf %32, %34 : vector<8x128xf32>
    %cst_18 = arith.constant 1.000000e-03 : f32
    %36 = vector.broadcast %cst_18 : f32 to vector<8x128xf32>
    %37 = arith.addf %35, %36 : vector<8x128xf32>
    %c4_i32 = arith.constant 4 : i32
    %38 = vector.broadcast %c4_i32 : i32 to vector<8x128xi32>
    %39 = arith.cmpi slt, %24, %38 : vector<8x128xi32>
    %c8_i32 = arith.constant 8 : i32
    %40 = vector.broadcast %c8_i32 : i32 to vector<8x128xi32>
    %41 = arith.cmpi slt, %24, %40 : vector<8x128xi32>
    %42 = arith.select %41, %37, %23 : vector<8x128xi1>, vector<8x128xf32>
    %43 = arith.select %39, %27, %42 : vector<8x128xi1>, vector<8x128xf32>
    %c0_19 = arith.constant 0 : index
    %c0_20 = arith.constant 0 : index
    %44 = vector.load %arg4[%c0_19, %c0_20] : memref<8x128xf32, #tpu.memory_space<vmem>>, vector<8x128xf32>
    tpu.vector_store %arg4[%c0_19, %c0_20], %43 {strides = array<i32>} : memref<8x128xf32, #tpu.memory_space<vmem>>, vector<8x128xf32>,
    return
  }
  func.func @transform_0(%arg0: i32) -> (i32, i32) {
    %c0_i32 = arith.constant 0 : i32
    %c0_i32_0 = arith.constant 0 : i32
    return %arg0, %c0_i32 : i32, i32
  }
  func.func @transform_1(%arg0: i32) -> (i32, i32) {
    %c0_i32 = arith.constant 0 : i32
    %c0_i32_0 = arith.constant 0 : i32
    %c0_i32_1 = arith.constant 0 : i32
    return %c0_i32, %c0_i32_0 : i32, i32
  }
  func.func @transform_2(%arg0: i32) -> (i32, i32) {
    %c0_i32 = arith.constant 0 : i32
    %c0_i32_0 = arith.constant 0 : i32
    %c0_i32_1 = arith.constant 0 : i32
    return %c0_i32, %c0_i32_0 : i32, i32
  }
  func.func @transform_3(%arg0: i32) -> (i32, i32) {
    %c0_i32 = arith.constant 0 : i32
    %c0_i32_0 = arith.constant 0 : i32
    return %arg0, %c0_i32 : i32, i32
  }
}

</mosaic_0001>

<bundles_post_ra>
// kernel: a3c_net_forward.1
= control target key start
LH: loop header
LB: loop body
LE: loop exit
PB: predicated region body
PF: predicated region fallthrough
CT: control target
= control target key end

     0   :  { %8 = vsyncpa [#allocation3], 0  ;;  %s4211_s0 = inlined_call_operand.vmem [shape: f32[8,16], index: 0, kind: input, shape index: {}]   ;;  %s4212_s1 = inlined_call_operand.hbm [shape: f32[528,256], index: 1, kind: input, shape index: {}]   ;;  %s4213_s2 = inlined_call_operand.hbm [shape: f32[8,256], index: 2, kind: input, shape index: {}]   ;;  %s4214_s3 = inlined_call_operand.vmem [shape: f32[8,128], index: 3, kind: output, shape index: {}]  }
   0x1   :  { %s16_s14 = sshll.u32 %s4212_s1, 4  ;;  %s17_s14 = int_to_ptr.hbm [resolvable:$true] %s16_s14 }
   0x2   :  { %9 = vsyncpa [#allocation5], 0  ;;  %s2628_s15 = smov [#allocation2]   ;;  %s30_s19 = sshll.u32 %s4213_s2, 4  ;;  %s31_s19 = int_to_ptr.hbm [resolvable:$true] %s30_s19 }
   0x3   :  { %s18_s16 = sshll.u32 %s2628_s15, 4  ;;  %s2629_s20 = smov 256   ;;  %s19_s16 = int_to_ptr.vmem [resolvable:$true] %s18_s16 }
   0x4   :  { %s2630_s21 = smov 16   ;;  %s2631_s22 = smov [#allocation4]  }
   0x5   :  { %24 = dma.hbm_to_vmem [thread:$0]  %s17_s14, 16896, %s19_s16, [#allocation3], %s2629_s20, %s2629_s20, %s2630_s21  }
   0x6   :  { %s32_s23 = sshll.u32 %s2631_s22, 4  ;;  %s33_s23 = int_to_ptr.vmem [resolvable:$true] %s32_s23 }
   0x7   :  { %35 = dma.hbm_to_vmem [thread:$0]  %s31_s19, 256, %s33_s23, [#allocation5]  }
   0x8   :  { %2624 = dma.done.wait [#allocation3], 16896  }
   0x9   :  { %2625 = vsyncadd [#allocation3], 4294950400 }
   0xa   :  { %2626 = dma.done.wait [#allocation5], 256  }
   0xb   :  { %2627 = vsyncadd [#allocation5], 4294967040  ;;  %vm56_vm0 = vcmask 130048   ;;  %v47_v0 = vld [vmem:[#allocation2 + $0x10] sm:$0xff]  ;;  %v45_v1 = vld [vmem:[#allocation2] sm:$0xff] }
   0xc   :  { %v44_v2 = vld [vmem:[%s4211_s0] sm:$0xff]  ;;  %v2661_v3 = vand.u32 4294901760, %v47_v0  ;;  %v2663_v4 = vand.u32 4294901760, %v45_v1  ;;  %v48_v6 = vld [vmem:[#allocation2 + $0x18] sm:$0xff]  ;;  %v46_v7 = vld [vmem:[#allocation2 + $0x8] sm:$0xff] }
   0xd   :  { %v58_v5 = vsel %vm56_vm0, %v44_v2, 0  ;;  %v412_v8 = vld [vmem:[#allocation2 + $0x110] sm:$0xff]  ;;  %v2667_v10 = vand.u32 4294901760, %v48_v6  ;;  %v2669_v11 = vand.u32 4294901760, %v46_v7  ;;  %v410_v12 = vld [vmem:[#allocation2 + $0x100] sm:$0xff] }
   0xe   :  { %v2665_v9 = vand.u32 4294901760, %v58_v5  ;;  %v102_v13 = vsub.f32 %v47_v0, %v2661_v3  ;;  %75 = vmatpush.msra.mxu0 %v2661_v3  ;;  %v108_v14 = vsub.f32 %v45_v1, %v2663_v4  ;;  %159 = vmatpush.msra.mxu3 %v2661_v3  ;;  %v2675_v15 = vand.u32 4294901760, %v412_v8  ;;  %v408_v16 = vld [vmem:[#allocation2 + $0xf0] sm:$0xff]  ;;  %v406_v27 = vld [vmem:[#allocation2 + $0xe0] sm:$0xff] }
   0xf   :  { %v261_v18 = vsub.f32 %v48_v6, %v2667_v10  ;;  %v2682_v19 = vsub.f32 %v46_v7, %v2669_v11  ;;  %v2685_v22 = vand.u32 4294901760, %v410_v12  ;;  %v2692_v26 = vand.u32 4294901760, %v408_v16  ;;  %v404_v34 = vld [vmem:[#allocation2 + $0xd0] sm:$0xff]  ;;  %v402_v43 = vld [vmem:[#allocation2 + $0xc0] sm:$0xff] }
  0x10   :  { %v2678_v17 = vsub.f32 %v58_v5, %v2665_v9  ;;  %134 = vmatpush.msra.mxu2 %v102_v13  ;;  %77 = vmatpush.msra.mxu0 %v2663_v4  ;;  %v103_v20 = vand.u32 4294901760, %v102_v13  ;;  %v109_v21 = vand.u32 4294901760, %v108_v14  ;;  %v2695_v30 = vsub.f32 %v412_v8, %v2675_v15  ;;  %v400_v46 = vld [vmem:[#allocation2 + $0xb0] sm:$0xff]  ;;  %v398_v51 = vld [vmem:[#allocation2 + $0xa0] sm:$0xff] }
  0x11   :  { %161 = vmatpush.msra.mxu3 %v2663_v4  ;;  %v262_v24 = vand.u32 4294901760, %v261_v18  ;;  %v268_v25 = vand.u32 4294901760, %v2682_v19  ;;  %v2704_v37 = vsub.f32 %v410_v12, %v2685_v22  ;;  %v2706_v38 = vand.u32 4294901760, %v406_v27  ;;  %v396_v55 = vld [vmem:[#allocation2 + $0x90] sm:$0xff]  ;;  %v394_v60 = vld [vmem:[#allocation2 + $0x80] sm:$0xff] }
  0x12   :  { %v2689_v23 = vand.u32 4294901760, %v2678_v17  ;;  %137 = vmatpush.msra.mxu2 %v108_v14  ;;  %v104_v28 = vsub.f32 %v102_v13, %v103_v20  ;;  %v110_v29 = vsub.f32 %v108_v14, %v109_v21  ;;  %186 = vmatpush.msrb.mxu0 %v103_v20  ;;  %v2709_v42 = vsub.f32 %v408_v16, %v2692_v26  ;;  %v392_v2 = vld [vmem:[#allocation2 + $0x70] sm:$0xff] }
  0x13   :  { %140 = vmatmul.f32.vlgmr.msra.gmra.mxu2 %v2678_v17  ;;  %v263_v32 = vsub.f32 %v261_v18, %v262_v24  ;;  %v269_v33 = vsub.f32 %v2682_v19, %v268_v25  ;;  %v528_v44 = vand.u32 4294901760, %v2695_v30  ;;  %v2713_v45 = vand.u32 4294901760, %v404_v34 }
  0x14   :  { %v81_v31 = vsub.f32 %v2678_v17, %v2689_v23  ;;  %165 = vmatmul.f32.vlgmr.msra.gmra.mxu3 %v2689_v23  ;;  %v105_v35 = vand.u32 4294901760, %v104_v28  ;;  %v111_v36 = vand.u32 4294901760, %v110_v29  ;;  %234 = vmatpush.msrb.mxu2 %v2667_v10  ;;  %v534_v47 = vand.u32 4294901760, %v2704_v37 }
  0x15   :  { %190 = vmatpush.msrb.mxu0 %v109_v21  ;;  %v264_v40 = vand.u32 4294901760, %v263_v32  ;;  %v270_v41 = vand.u32 4294901760, %v269_v33  ;;  %v2717_v48 = vsub.f32 %v406_v27, %v2706_v38  ;;  %v2719_v49 = vand.u32 4294901760, %v402_v43  ;;  %v384_v33 = vld [vmem:[#allocation2 + $0x30] sm:$0xff] }
  0x16   :  { %v82_v39 = vand.u32 4294901760, %v81_v31  ;;  %106 = vmatpush.msra.mxu1 %v105_v35  ;;  %236 = vmatpush.msrb.mxu2 %v2669_v11  ;;  %v540_v50 = vand.u32 4294901760, %v2709_v42  ;;  %v529_v52 = vsub.f32 %v2695_v30, %v528_v44  ;;  %v2728_v53 = vsub.f32 %v404_v34, %v2713_v45 }
  0x17   :  { %265 = vmatpush.msrb.mxu3 %v264_v40  ;;  %v2730_v54 = vand.u32 4294901760, %v400_v46  ;;  %v535_v56 = vsub.f32 %v2704_v37, %v534_v47  ;;  %v546_v57 = vand.u32 4294901760, %v2717_v48  ;;  %v2739_v58 = vsub.f32 %v402_v43, %v2719_v49  ;;  %v382_v40 = vld [vmem:[#allocation2 + $0x20] sm:$0xff] }
  0x18   :  { %83 = vmatmul.f32.vlgmr.msra.gmra.mxu0 %v82_v39  ;;  %112 = vmatpush.msra.mxu1 %v111_v36  ;;  %v2741_v59 = vand.u32 4294901760, %v398_v51  ;;  %v541_v61 = vsub.f32 %v2709_v42, %v540_v50  ;;  %v530_v62 = vand.u32 4294901760, %v529_v52  ;;  %v552_v63 = vand.u32 4294901760, %v2728_v53 }
  0x19   :  { %345 = vmatpush.msra.mxu2 %v262_v24  ;;  %114 = vmatmul.f32.vlgmr.msra.gmra.mxu1 %v2665_v9  ;;  %v2752_v0 = vsub.f32 %v400_v46, %v2730_v54  ;;  %v2754_v1 = vand.u32 4294901760, %v396_v55  ;;  %v547_v5 = vsub.f32 %v2717_v48, %v546_v57  ;;  %v558_v6 = vand.u32 4294901760, %v2739_v58 }
  0x1a   :  { %271 = vmatpush.msrb.mxu3 %v270_v41  ;;  %211 = vmatpush.msrb.mxu1 %v2661_v3  ;;  %v2758_v3 = vand.u32 4294901760, %v394_v60  ;;  %v2767_v7 = vsub.f32 %v398_v51, %v2741_v59  ;;  %v2771_v8 = vand.u32 4294901760, %v392_v2  ;;  %v553_v12 = vsub.f32 %v2728_v53, %v552_v63 }
  0x1b   :  { %293 = vmatpush.msra.mxu0 %v261_v18  ;;  %242 = vmatmul.f32.vlgmr.msrb.gmra.mxu2 %v82_v39  ;;  %v564_v13 = vand.u32 4294901760, %v2752_v0  ;;  %v2779_v14 = vsub.f32 %v396_v55, %v2754_v1  ;;  %v388_v18 = vld [vmem:[#allocation2 + $0x50] sm:$0xff]  ;;  %v559_v20 = vsub.f32 %v2739_v58, %v558_v6  ;;  %v2827_v51 = vand.u32 4294901760, %v384_v33 }
  0x1c   :  { %273 = vmatmul.f32.vlgmr.msrb.gmra.mxu3 %v2665_v9  ;;  %213 = vmatpush.msrb.mxu1 %v2663_v4  ;;  %v536_v4 = vand.u32 4294901760, %v535_v56  ;;  %v2784_v16 = vsub.f32 %v394_v60, %v2758_v3  ;;  %v570_v21 = vand.u32 4294901760, %v2767_v7  ;;  %v554_v27 = vand.u32 4294901760, %v553_v12 }
  0x1d   :  { %349 = vmatpush.msra.mxu2 %v268_v25  ;;  %370 = vmatpush.msra.mxu3 %v2667_v10  ;;  %v386_v25 = vld [vmem:[#allocation2 + $0x40] sm:$0xff]  ;;  %v565_v28 = vsub.f32 %v2752_v0, %v564_v13  ;;  %v576_v29 = vand.u32 4294901760, %v2779_v14  ;;  %v2803_v31 = vand.u32 4294901760, %v388_v18  ;;  %v560_v34 = vand.u32 4294901760, %v559_v20 }
  0x1e   :  { %296 = vmatpush.msra.mxu0 %v2682_v19  ;;  %318 = vmatpush.msra.mxu1 %v2667_v10  ;;  %v390_v10 = vld [vmem:[#allocation2 + $0x60] sm:$0xff]  ;;  %v548_v19 = vand.u32 4294901760, %v547_v5  ;;  %v582_v32 = vand.u32 4294901760, %v2784_v16  ;;  %v571_v35 = vsub.f32 %v2767_v7, %v570_v21  ;;  %v2815_v39 = vand.u32 4294901760, %v386_v25 }
  0x1f   :  { %629 = vmatpush.msrb.mxu2 %v2695_v30  ;;  %372 = vmatpush.msra.mxu3 %v2669_v11  ;;  %v2791_v24 = vand.u32 4294901760, %v390_v10  ;;  %v566_v41 = vand.u32 4294901760, %v565_v28  ;;  %v577_v43 = vsub.f32 %v2779_v14, %v576_v29  ;;  %v2825_v46 = vsub.f32 %v388_v18, %v2803_v31  ;;  %v434_v30 = vld [vmem:[#allocation2 + $0x1c0] sm:$0xff] }
  0x20   :  { %192 = vmatmul.f32.vlgmr.msrb.gmra.mxu0 %v2665_v9  ;;  %320 = vmatpush.msra.mxu1 %v2669_v11  ;;  %v542_v11 = vand.u32 4294901760, %v541_v61  ;;  %v572_v52 = vand.u32 4294901760, %v571_v35  ;;  %v2837_v56 = vsub.f32 %v386_v25, %v2815_v39  ;;  %v2839_v60 = vand.u32 4294901760, %v382_v40  ;;  %v444_v61 = vld [vmem:[#allocation2 + $0x210] sm:$0xff] }
  0x21   :  { %632 = vmatpush.msrb.mxu2 %v2704_v37  ;;  %215 = vmatmul.f32.vlgmr.msrb.gmra.mxu1 %v2665_v9  ;;  %v2813_v36 = vsub.f32 %v390_v10, %v2791_v24  ;;  %v2849_v5 = vsub.f32 %v384_v33, %v2827_v51  ;;  %v442_v10 = vld [vmem:[#allocation2 + $0x200] sm:$0xff]  ;;  %v2993_v37 = vand.u32 4294901760, %v434_v30 }
  0x22   :  { %682 = vmatpush.msrb.mxu3 %v2675_v15  ;;  %531 = vmatpush.msrb.mxu1 %v530_v62  ;;  %v578_v62 = vand.u32 4294901760, %v577_v43  ;;  %v2861_v20 = vsub.f32 %v382_v40, %v2839_v60  ;;  %v2865_v25 = vand.u32 4294901760, %v442_v10  ;;  %v438_v40 = vld [vmem:[#allocation2 + $0x1e0] sm:$0xff] }
  0x23   :  { %635 = vmatpush.msrb.mxu2 %v2709_v42  ;;  %486 = vmatpush.msrb.mxu0 %v2675_v15  ;;  %v594_v55 = vand.u32 4294901760, %v2813_v36  ;;  %v432_v42 = vld [vmem:[#allocation2 + $0x1b0] sm:$0xff] }
  0x24   :  { %351 = vmatmul.f32.vlgmr.msra.gmra.mxu2 %v2665_v9  ;;  %374 = vmatmul.f32.vlgmr.msra.gmra.mxu3 %v2665_v9  ;;  %v2796_v9 = vsub.f32 %v392_v2, %v2771_v8 }
  0x25   :  { %537 = vmatpush.msrb.mxu1 %v536_v4  ;;  %684 = vmatpush.msrb.mxu3 %v2685_v22  ;;  %v600_v4 = vand.u32 4294901760, %v2825_v46  ;;  %v595_v18 = vsub.f32 %v2813_v36, %v594_v55 }
  0x26   :  { %638 = vmatpush.msrb.mxu2 %v2717_v48  ;;  %488 = vmatpush.msrb.mxu0 %v2685_v22  ;;  %v430_v48 = vld [vmem:[#allocation2 + $0x1a0] sm:$0xff] }
  0x27   :  { %543 = vmatpush.msrb.mxu1 %v542_v11  ;;  %686 = vmatpush.msrb.mxu3 %v2692_v26  ;;  %v2853_v11 = vand.u32 4294901760, %v444_v61  ;;  %v601_v33 = vsub.f32 %v2825_v46, %v600_v4 }
  0x28   :  { %299 = vmatmul.f32.vlgmr.msra.gmra.mxu0 %v2678_v17  ;;  %641 = vmatpush.msrb.mxu2 %v2728_v53  ;;  %v588_v17 = vand.u32 4294901760, %v2796_v9  ;;  %v3010_v53 = vand.u32 4294901760, %v430_v48 }
  0x29   :  { %549 = vmatpush.msrb.mxu1 %v548_v19  ;;  %688 = vmatpush.msrb.mxu3 %v2706_v38  ;;  %v4216_v19 = vand.u32 4294901760, %v2837_v56  ;;  %v2875_v35 = vsub.f32 %v444_v61, %v2853_v11  ;;  %v2887_v61 = vsub.f32 %v442_v10, %v2865_v25 }
  0x2a   :  { %324 = vmatmul.f32.vlgmr.msra.gmra.mxu1 %v2689_v23  ;;  %490 = vmatpush.msrb.mxu0 %v2692_v26  ;;  %v583_v23 = vsub.f32 %v2784_v16, %v582_v32  ;;  %v589_v2 = vsub.f32 %v2796_v9, %v588_v17 }
  0x2b   :  { %555 = vmatpush.msrb.mxu1 %v554_v27  ;;  %644 = vmatpush.msrb.mxu2 %v2739_v58  ;;  %v440_v27 = vld [vmem:[#allocation2 + $0x1f0] sm:$0xff]  ;;  %v607_v43 = vsub.f32 %v2837_v56, %v4216_v19 }
  0x2c   :  { %690 = vmatpush.msrb.mxu3 %v2713_v45  ;;  %492 = vmatpush.msrb.mxu0 %v2706_v38  ;;  %v584_v12 = vand.u32 4294901760, %v583_v23  ;;  %v590_v28 = vand.u32 4294901760, %v589_v2  ;;  %v618_v23 = vand.u32 4294901760, %v2861_v20 }
  0x2d   :  { %561 = vmatpush.msrb.mxu1 %v560_v34  ;;  %647 = vmatpush.msrb.mxu2 %v2752_v0  ;;  %v4215_v34 = vand.u32 4294901760, %v2849_v5  ;;  %v608_v10 = vand.u32 4294901760, %v607_v43 }
  0x2e   :  { %692 = vmatpush.msrb.mxu3 %v2719_v49  ;;  %494 = vmatpush.msrb.mxu0 %v2713_v45 }
  0x2f   :  { %567 = vmatpush.msrb.mxu1 %v566_v41  ;;  %650 = vmatpush.msrb.mxu2 %v2767_v7  ;;  %v596_v41 = vand.u32 4294901760, %v595_v18  ;;  %v613_v2 = vsub.f32 %v2849_v5, %v4215_v34  ;;  %v869_v18 = vand.u32 4294901760, %v2875_v35  ;;  %v875_v34 = vand.u32 4294901760, %v2887_v61 }
  0x30   :  { %694 = vmatpush.msrb.mxu3 %v2730_v54  ;;  %496 = vmatpush.msrb.mxu0 %v2719_v49 }
  0x31   :  { %573 = vmatpush.msrb.mxu1 %v572_v52  ;;  %653 = vmatpush.msrb.mxu2 %v2779_v14  ;;  %v2882_v52 = vand.u32 4294901760, %v440_v27 }
  0x32   :  { %696 = vmatpush.msrb.mxu3 %v2741_v59  ;;  %498 = vmatpush.msrb.mxu0 %v2730_v54 }
  0x33   :  { %579 = vmatpush.msrb.mxu1 %v578_v62  ;;  %656 = vmatpush.msrb.mxu2 %v2784_v16  ;;  %v602_v62 = vand.u32 4294901760, %v601_v33  ;;  %v2903_v33 = vsub.f32 %v440_v27, %v2882_v52  ;;  %v870_v27 = vsub.f32 %v2875_v35, %v869_v18  ;;  %v424_v16 = vld [vmem:[#allocation2 + $0x170] sm:$0xff] }
  0x34   :  { %698 = vmatpush.msrb.mxu3 %v2754_v1  ;;  %500 = vmatpush.msrb.mxu0 %v2741_v59 }
  0x35   :  { %585 = vmatpush.msrb.mxu1 %v584_v12  ;;  %659 = vmatpush.msrb.mxu2 %v2796_v9  ;;  %v2893_v12 = vand.u32 4294901760, %v438_v40  ;;  %v3037_v9 = vand.u32 4294901760, %v424_v16 }
  0x36   :  { %700 = vmatpush.msrb.mxu3 %v2758_v3  ;;  %502 = vmatpush.msrb.mxu0 %v2754_v1 }
  0x37   :  { %591 = vmatpush.msrb.mxu1 %v590_v28  ;;  %662 = vmatpush.msrb.mxu2 %v2813_v36  ;;  %v619_v28 = vsub.f32 %v2861_v20, %v618_v23  ;;  %v2910_v19 = vsub.f32 %v438_v40, %v2893_v12  ;;  %v876_v40 = vsub.f32 %v2887_v61, %v875_v34 }
  0x38   :  { %702 = vmatpush.msrb.mxu3 %v2771_v8  ;;  %504 = vmatpush.msrb.mxu0 %v2758_v3 }
  0x39   :  { %597 = vmatpush.msrb.mxu1 %v596_v41  ;;  %665 = vmatpush.msrb.mxu2 %v2825_v46  ;;  %v614_v41 = vand.u32 4294901760, %v613_v2  ;;  %v620_v43 = vand.u32 4294901760, %v619_v28  ;;  %v887_v2 = vand.u32 4294901760, %v2910_v19  ;;  %v3053_v46 = vsub.f32 %v424_v16, %v3037_v9 }
  0x3a   :  { %704 = vmatpush.msrb.mxu3 %v2791_v24  ;;  %506 = vmatpush.msrb.mxu0 %v2771_v8 }
  0x3b   :  { %603 = vmatpush.msrb.mxu1 %v602_v62  ;;  %668 = vmatpush.msrb.mxu2 %v2837_v56  ;;  %v4217_v62 = vand.u32 4294901760, %v2903_v33 }
  0x3c   :  { %706 = vmatpush.msrb.mxu3 %v2803_v31  ;;  %508 = vmatpush.msrb.mxu0 %v2791_v24 }
  0x3d   :  { %609 = vmatpush.msrb.mxu1 %v608_v10  ;;  %671 = vmatpush.msrb.mxu2 %v2849_v5  ;;  %v871_v10 = vand.u32 4294901760, %v870_v27  ;;  %v882_v28 = vsub.f32 %v2903_v33, %v4217_v62  ;;  %v888_v27 = vsub.f32 %v2910_v19, %v887_v2 }
  0x3e   :  { %708 = vmatpush.msrb.mxu3 %v2815_v39  ;;  %510 = vmatpush.msrb.mxu0 %v2803_v31 }
  0x3f   :  { %615 = vmatpush.msrb.mxu1 %v614_v41  ;;  %674 = vmatpush.msrb.mxu2 %v2861_v20  ;;  %v877_v41 = vand.u32 4294901760, %v876_v40  ;;  %v889_v62 = vand.u32 4294901760, %v888_v27 }
  0x40   :  { %710 = vmatpush.msrb.mxu3 %v2827_v51  ;;  %512 = vmatpush.msrb.mxu0 %v2815_v39 }
  0x41   :  { %621 = vmatpush.msrb.mxu1 %v620_v43  ;;  %827 = vmatpush.msra.mxu2 %v2853_v11  ;;  %v436_v43 = vld [vmem:[#allocation2 + $0x1d0] sm:$0xff] }
  0x42   :  { %712 = vmatpush.msrb.mxu3 %v2839_v60  ;;  %514 = vmatpush.msrb.mxu0 %v2827_v51  ;;  %v2945_v40 = vand.u32 4294901760, %v436_v43 }
  0x43   :  { %790 = vmatpush.msra.mxu1 %v2675_v15  ;;  %829 = vmatpush.msra.mxu2 %v2865_v25  ;;  %v883_v15 = vand.u32 4294901760, %v882_v28 }
  0x44   :  { %872 = vmatpush.msra.mxu3 %v871_v10  ;;  %516 = vmatpush.msrb.mxu0 %v2839_v60 }
  0x45   :  { %792 = vmatpush.msra.mxu1 %v2685_v22  ;;  %831 = vmatpush.msra.mxu2 %v2882_v52  ;;  %v4251_v22 = vand.u32 4294901760, %v2837_v56 }
  0x46   :  { %878 = vmatpush.msra.mxu3 %v877_v41  ;;  %723 = vmatpush.msra.mxu0 %v528_v44 }
  0x47   :  { %794 = vmatpush.msra.mxu1 %v2692_v26  ;;  %833 = vmatpush.msra.mxu2 %v2893_v12  ;;  %v4252_v26 = vand.u32 4294901760, %v2849_v5 }
  0x48   :  { %884 = vmatpush.msra.mxu3 %v883_v15  ;;  %727 = vmatpush.msra.mxu0 %v534_v47  ;;  %v3003_v47 = vsub.f32 %v434_v30, %v2993_v37 }
  0x49   :  { %796 = vmatpush.msra.mxu1 %v2706_v38  ;;  %835 = vmatpush.msra.mxu2 %v2945_v40  ;;  %v2996_v38 = vsub.f32 %v436_v43, %v2945_v40  ;;  %v416_v43 = vld [vmem:[#allocation2 + $0x130] sm:$0xff] }
  0x4a   :  { %890 = vmatpush.msra.mxu3 %v889_v62  ;;  %731 = vmatpush.msra.mxu0 %v540_v50  ;;  %v899_v50 = vand.u32 4294901760, %v3003_v47 }
  0x4b   :  { %798 = vmatpush.msra.mxu1 %v2713_v45  ;;  %837 = vmatpush.msra.mxu2 %v2993_v37  ;;  %v893_v44 = vand.u32 4294901760, %v2996_v38  ;;  %v3000_v45 = vand.u32 4294901760, %v432_v42 }
  0x4c   :  { %735 = vmatpush.msra.mxu0 %v546_v57  ;;  %v428_v57 = vld [vmem:[#allocation2 + $0x190] sm:$0xff] }
  0x4d   :  { %800 = vmatpush.msra.mxu1 %v2719_v49  ;;  %v894_v49 = vsub.f32 %v2996_v38, %v893_v44  ;;  %839 = vmatpush.msra.mxu2 %v3000_v45  ;;  %v3020_v0 = vand.u32 4294901760, %v428_v57 }
  0x4e   :  { %739 = vmatpush.msra.mxu0 %v552_v63 }
  0x4f   :  { %802 = vmatpush.msra.mxu1 %v2730_v54  ;;  %v3013_v54 = vsub.f32 %v432_v42, %v3000_v45  ;;  %v895_v58 = vand.u32 4294901760, %v894_v49  ;;  %841 = vmatpush.msra.mxu2 %v3010_v53 }
  0x50   :  { %743 = vmatpush.msra.mxu0 %v558_v6 }
  0x51   :  { %804 = vmatpush.msra.mxu1 %v2741_v59  ;;  %v900_v59 = vsub.f32 %v3003_v47, %v899_v50  ;;  %v905_v63 = vand.u32 4294901760, %v3013_v54  ;;  %896 = vmatpush.msra.mxu3 %v895_v58 }
  0x52   :  { %747 = vmatpush.msra.mxu0 %v564_v13  ;;  %843 = vmatpush.msra.mxu2 %v3020_v0  ;;  %v3032_v13 = vsub.f32 %v428_v57, %v3020_v0  ;;  %v414_v57 = vld [vmem:[#allocation2 + $0x120] sm:$0xff] }
  0x53   :  { %806 = vmatpush.msra.mxu1 %v2754_v1  ;;  %v3023_v1 = vsub.f32 %v430_v48, %v3010_v53  ;;  %v901_v6 = vand.u32 4294901760, %v900_v59  ;;  %v906_v7 = vsub.f32 %v3013_v54, %v905_v63  ;;  %v3090_v59 = vand.u32 4294901760, %v414_v57 }
  0x54   :  { %751 = vmatpush.msra.mxu0 %v570_v21 }
  0x55   :  { %808 = vmatpush.msra.mxu1 %v2758_v3  ;;  %v426_v3 = vld [vmem:[#allocation2 + $0x180] sm:$0xff]  ;;  %v911_v14 = vand.u32 4294901760, %v3023_v1  ;;  %902 = vmatpush.msra.mxu3 %v901_v6  ;;  %v907_v21 = vand.u32 4294901760, %v906_v7 }
  0x56   :  { %755 = vmatpush.msra.mxu0 %v576_v29 }
  0x57   :  { %810 = vmatpush.msra.mxu1 %v2771_v8  ;;  %v3029_v8 = vand.u32 4294901760, %v426_v3  ;;  %908 = vmatpush.msra.mxu3 %v907_v21  ;;  %v3101_v21 = vsub.f32 %v414_v57, %v3090_v59 }
  0x58   :  { %759 = vmatpush.msra.mxu0 %v582_v32  ;;  %v422_v32 = vld [vmem:[#allocation2 + $0x160] sm:$0xff] }
  0x59   :  { %812 = vmatpush.msra.mxu1 %v2791_v24  ;;  %845 = vmatpush.msra.mxu2 %v3029_v8  ;;  %v917_v24 = vand.u32 4294901760, %v3032_v13  ;;  %v3040_v29 = vsub.f32 %v426_v3, %v3029_v8 }
  0x5a   :  { %763 = vmatpush.msra.mxu0 %v588_v17  ;;  %v3050_v17 = vand.u32 4294901760, %v422_v32 }
  0x5b   :  { %814 = vmatpush.msra.mxu1 %v2803_v31  ;;  %v912_v31 = vsub.f32 %v3023_v1, %v911_v14  ;;  %v918_v36 = vsub.f32 %v3032_v13, %v917_v24  ;;  %847 = vmatpush.msra.mxu2 %v3037_v9 }
  0x5c   :  { %767 = vmatpush.msra.mxu0 %v594_v55  ;;  %v420_v55 = vld [vmem:[#allocation2 + $0x150] sm:$0xff]  ;;  %v3063_v20 = vsub.f32 %v422_v32, %v3050_v17 }
  0x5d   :  { %816 = vmatpush.msra.mxu1 %v2815_v39  ;;  %v923_v39 = vand.u32 4294901760, %v3040_v29  ;;  %v919_v56 = vand.u32 4294901760, %v918_v36  ;;  %849 = vmatpush.msra.mxu2 %v3050_v17  ;;  %v3060_v5 = vand.u32 4294901760, %v420_v55  ;;  %v4220_v36 = vand.u32 4294901760, %v3101_v21 }
  0x5e   :  { %771 = vmatpush.msra.mxu0 %v600_v4  ;;  %v4223_v4 = vand.u32 4294901760, %v3053_v46  ;;  %v4222_v27 = vand.u32 4294901760, %v3063_v20 }
  0x5f   :  { %818 = vmatpush.msra.mxu1 %v2827_v51  ;;  %v913_v51 = vand.u32 4294901760, %v912_v31  ;;  %851 = vmatpush.msra.mxu2 %v3060_v5  ;;  %v3072_v41 = vsub.f32 %v420_v55, %v3060_v5  ;;  %v960_v55 = vsub.f32 %v3101_v21, %v4220_v36 }
  0x60   :  { %775 = vmatpush.msra.mxu0 %v4251_v22  ;;  %v930_v10 = vsub.f32 %v3053_v46, %v4223_v4  ;;  %v936_v42 = vsub.f32 %v3063_v20, %v4222_v27 }
  0x61   :  { %820 = vmatpush.msra.mxu1 %v2839_v60  ;;  %v924_v60 = vsub.f32 %v3040_v29, %v923_v39  ;;  %914 = vmatpush.msra.mxu3 %v913_v51  ;;  %v4221_v22 = vand.u32 4294901760, %v3072_v41 }
  0x62   :  { %779 = vmatpush.msra.mxu0 %v4252_v26  ;;  %v931_v15 = vand.u32 4294901760, %v930_v10  ;;  %v3077_v26 = vand.u32 4294901760, %v416_v43  ;;  %v937_v58 = vand.u32 4294901760, %v936_v42 }
  0x63   :  { %v925_v62 = vand.u32 4294901760, %v924_v60  ;;  %920 = vmatpush.msra.mxu3 %v919_v56  ;;  %v942_v48 = vsub.f32 %v3072_v41, %v4221_v22  ;;  %v961_v56 = vand.u32 4294901760, %v960_v55  ;;  %v49_v60 = vld [vmem:[#allocation4] ss:$8 sm:$0x3] }
  0x64   :  { %783 = vmatpush.msra.mxu0 %v618_v23  ;;  %v418_v23 = vld [vmem:[#allocation2 + $0x140] sm:$0xff]  ;;  %v3093_v3 = vsub.f32 %v416_v43, %v3077_v26 }
  0x65   :  { %v3069_v28 = vand.u32 4294901760, %v418_v23  ;;  %926 = vmatpush.msra.mxu3 %v925_v62  ;;  %v943_v6 = vand.u32 4294901760, %v942_v48 }
  0x66   :  { %v4218_v16 = vand.u32 4294901760, %v3093_v3 }
  0x67   :  { %853 = vmatpush.msra.mxu2 %v3069_v28  ;;  %v3080_v30 = vsub.f32 %v418_v23, %v3069_v28  ;;  %932 = vmatpush.msra.mxu3 %v931_v15  ;;  %v52_v23 = vperm.slane %v49_v60, 0 }
  0x68   :  { %v954_v32 = vsub.f32 %v3093_v3, %v4218_v16 }
  0x69   :  { %855 = vmatpush.msra.mxu2 %v3077_v26  ;;  %v4219_v49 = vand.u32 4294901760, %v3080_v30  ;;  %938 = vmatpush.msra.mxu3 %v937_v58 }
  0x6a   :  { %v955_v51 = vand.u32 4294901760, %v954_v32 }
  0x6b   :  { %v948_v7 = vsub.f32 %v3080_v30, %v4219_v49  ;;  %857 = vmatpush.msra.mxu2 %v3090_v59  ;;  %944 = vmatpush.msra.mxu3 %v943_v6  ;;  %v53_v6 = vperm.slane %v49_v60, 1 }
  0x6d   :  { %v949_v31 = vand.u32 4294901760, %v948_v7 }
  0x6f   :  { %950 = vmatpush.msra.mxu3 %v949_v31 }
  0x71   :  { %956 = vmatpush.msra.mxu3 %v955_v51 }
  0x73   :  { %962 = vmatpush.msra.mxu3 %v961_v56 }
  0x95   :  { %v84_v62 = vpop.f32.mrf.mxu0 }
  0x96   :  { %v85_v10 = vadd.f32 %v84_v62, %v52_v23  ;;  %v115_v43 = vpop.f32.mrf.mxu1  ;;  %v141_v15 = vpop.f32.mrf.mxu2 }
  0x97   :  { %v166_v48 = vpop.f32.mrf.mxu3 }
  0x98   :  { %v116_v42 = vadd.f32 %v115_v43, %v85_v10 }
  0x9a   :  { %v142_v57 = vadd.f32 %v141_v15, %v116_v42 }
  0x9c   :  { %v167_v58 = vadd.f32 %v166_v48, %v142_v57  ;;  %v399_v57 = vld [vmem:[#allocation2 + $0xa8] sm:$0xff] }
  0x9d   :  { %v193_v7 = vpop.f32.mrf.mxu0 }
  0x9e   :  { %v194_v31 = vadd.f32 %v193_v7, %v167_v58  ;;  %v216_v32 = vpop.f32.mrf.mxu1  ;;  %v243_v16 = vpop.f32.mrf.mxu2  ;;  %v4257_v58 = vand.u32 4294901760, %v3063_v20 }
  0x9f   :  { %v244_v36 = vadd.f32 %v243_v16, %v53_v6  ;;  %v274_v51 = vpop.f32.mrf.mxu3 }
  0xa0   :  { %v217_v49 = vadd.f32 %v216_v32, %v194_v31  ;;  %v4258_v31 = vand.u32 4294901760, %v3072_v41 }
  0xa1   :  { %v275_v56 = vadd.f32 %v274_v51, %v244_v36  ;;  %v3243_v51 = vand.u32 4294901760, %v399_v57 }
  0xa2   :  { %v378_v55 = vmax.f32 %v217_v49, 0.0 }
  0xa4   :  { %v380_v22 = vmin.f32 %v378_v55, 6.0  ;;  %v397_v55 = vld [vmem:[#allocation2 + $0x98] sm:$0xff] }
  0xa5   :  { %v300_v27 = vpop.f32.mrf.mxu0 }
  0xa6   :  { %v3110_v4 = vand.u32 4294901760, %v380_v22  ;;  %v301_v23 = vadd.f32 %v300_v27, %v275_v56  ;;  %v4259_v56 = vand.u32 4294901760, %v3080_v30 }
  0xa7   :  { %v325_v62 = vpop.f32.mrf.mxu1  ;;  %v352_v10 = vpop.f32.mrf.mxu2 }
  0xa8   :  { %v3113_v43 = vsub.f32 %v380_v22, %v3110_v4  ;;  %v326_v60 = vadd.f32 %v325_v62, %v301_v23  ;;  %623 = vmatmul.f32.vlgmr.msrb.gmra.mxu1 %v3110_v4  ;;  %v375_v15 = vpop.f32.mrf.mxu3 }
  0xa9   :  { %1023 = vmatpush.msrb.mxu1 %v2853_v11 }
  0xaa   :  { %v353_v16 = vadd.f32 %v352_v10, %v326_v60  ;;  %677 = vmatmul.f32.vlgmr.msrb.gmra.mxu2 %v3113_v43  ;;  %v3119_v49 = vand.u32 4294901760, %v3113_v43  ;;  %v3262_v60 = vand.u32 4294901760, %v397_v55 }
  0xab   :  { %1025 = vmatpush.msrb.mxu1 %v2865_v25  ;;  %1064 = vmatpush.msrb.mxu2 %v869_v18  ;;  %v4253_v18 = vand.u32 4294901760, %v2903_v33 }
  0xac   :  { %v376_v27 = vadd.f32 %v375_v15, %v353_v16  ;;  %716 = vmatmul.f32.vlgmr.msrb.gmra.mxu3 %v3119_v49  ;;  %v520_v22 = vsub.f32 %v3113_v43, %v3119_v49  ;;  %v4260_v15 = vand.u32 4294901760, %v3093_v3 }
  0xad   :  { %1027 = vmatpush.msrb.mxu1 %v2882_v52  ;;  %1068 = vmatpush.msrb.mxu2 %v875_v34 }
  0xae   :  { %v379_v36 = vmax.f32 %v376_v27, 0.0  ;;  %1131 = vmatpush.msrb.mxu3 %v2853_v11  ;;  %v3131_v42 = vand.u32 4294901760, %v520_v22  ;;  %v3271_v27 = vsub.f32 %v399_v57, %v3243_v51  ;;  %v393_v22 = vld [vmem:[#allocation2 + $0x78] sm:$0xff] }
  0xaf   :  { %1029 = vmatpush.msrb.mxu1 %v2893_v12  ;;  %1072 = vmatpush.msrb.mxu2 %v4253_v18 }
  0xb0   :  { %v381_v48 = vmin.f32 %v379_v36, 6.0  ;;  %1133 = vmatpush.msrb.mxu3 %v2865_v25  ;;  %522 = vmatmul.f32.vlgmr.msrb.gmra.mxu0 %v3131_v42  ;;  %v413_v25 = vld [vmem:[#allocation2 + $0x118] sm:$0xff] }
  0xb1   :  { %822 = vmatmul.f32.vlgmr.msra.gmra.mxu1 %v3110_v4  ;;  %970 = vmatpush.msrb.mxu0 %v2875_v35 }
  0xb2   :  { %v3140_v34 = vand.u32 4294901760, %v381_v48  ;;  %1031 = vmatpush.msrb.mxu1 %v2945_v40  ;;  %1076 = vmatpush.msrb.mxu2 %v887_v2 }
  0xb3   :  { %1135 = vmatpush.msrb.mxu3 %v2882_v52  ;;  %973 = vmatpush.msrb.mxu0 %v2887_v61  ;;  %v411_v52 = vld [vmem:[#allocation2 + $0x108] sm:$0xff] }
  0xb4   :  { %v3148_v11 = vsub.f32 %v381_v48, %v3140_v34  ;;  %1033 = vmatpush.msrb.mxu1 %v2993_v37  ;;  %1080 = vmatpush.msrb.mxu2 %v893_v44  ;;  %v3176_v2 = vand.u32 4294901760, %v411_v52  ;;  %v405_v44 = vld [vmem:[#allocation2 + $0xd8] sm:$0xff] }
  0xb5   :  { %1137 = vmatpush.msrb.mxu3 %v2893_v12  ;;  %976 = vmatpush.msrb.mxu0 %v2903_v33  ;;  %v3168_v12 = vand.u32 4294901760, %v413_v25  ;;  %v409_v33 = vld [vmem:[#allocation2 + $0xf8] sm:$0xff] }
  0xb6   :  { %4254 = vst [vmem:[#allocation8_spill] sm:$0xff] %v3148_v11  ;;  %v3156_v35 = vand.u32 4294901760, %v3148_v11  ;;  %1035 = vmatpush.msrb.mxu1 %v3000_v45  ;;  %1084 = vmatpush.msrb.mxu2 %v899_v50 }
  0xb7   :  { %1139 = vmatpush.msrb.mxu3 %v2945_v40  ;;  %979 = vmatpush.msrb.mxu0 %v2910_v19  ;;  %v407_v40 = vld [vmem:[#allocation2 + $0xe8] sm:$0xff] }
  0xb8   :  { %4255 = vst [vmem:[#allocation9_spill] sm:$0xff] %v3156_v35  ;;  %1037 = vmatpush.msrb.mxu1 %v3010_v53  ;;  %1088 = vmatpush.msrb.mxu2 %v905_v63  ;;  %v861_v61 = vsub.f32 %v3148_v11, %v3156_v35  ;;  %v403_v63 = vld [vmem:[#allocation2 + $0xc8] sm:$0xff] }
  0xb9   :  { %1141 = vmatpush.msrb.mxu3 %v2993_v37  ;;  %785 = vmatmul.f32.vlgmr.msra.gmra.mxu0 %v3110_v4  ;;  %v3184_v37 = vsub.f32 %v413_v25, %v3168_v12 }
  0xba   :  { %982 = vmatpush.msrb.mxu0 %v2996_v38  ;;  %1039 = vmatpush.msrb.mxu1 %v3020_v0  ;;  %v3174_v19 = vand.u32 4294901760, %v861_v61  ;;  %v3186_v38 = vand.u32 4294901760, %v409_v33  ;;  %v3289_v61 = vand.u32 4294901760, %v393_v22 }
  0xbb   :  { %1092 = vmatpush.msrb.mxu2 %v911_v14  ;;  %1143 = vmatpush.msrb.mxu3 %v3000_v45  ;;  %v3194_v45 = vsub.f32 %v411_v52, %v3176_v2  ;;  %v4240_v50 = vand.u32 4294901760, %v3184_v37  ;;  %v401_v14 = vld [vmem:[#allocation2 + $0xb8] sm:$0xff]  ;;  %v391_v52 = vld [vmem:[#allocation2 + $0x68] sm:$0xff] }
  0xbc   :  { %985 = vmatpush.msrb.mxu0 %v3003_v47  ;;  %1041 = vmatpush.msrb.mxu1 %v3029_v8  ;;  %v3196_v47 = vand.u32 4294901760, %v407_v40 }
  0xbd   :  { %1096 = vmatpush.msrb.mxu2 %v917_v24  ;;  %1145 = vmatpush.msrb.mxu3 %v3010_v53  ;;  %v3205_v53 = vsub.f32 %v409_v33, %v3186_v38  ;;  %v4256_v24 = vand.u32 4294901760, %v3053_v46 }
  0xbe   :  { %863 = vmatmul.f32.vlgmr.msra.gmra.mxu2 %v3174_v19  ;;  %988 = vmatpush.msrb.mxu0 %v3013_v54  ;;  %v3207_v54 = vand.u32 4294901760, %v405_v44 }
  0xbf   :  { %1043 = vmatpush.msrb.mxu1 %v3037_v9  ;;  %1100 = vmatpush.msrb.mxu2 %v923_v39  ;;  %v3220_v39 = vand.u32 4294901760, %v403_v63  ;;  %v4237_v6 = vand.u32 4294901760, %v3205_v53 }
  0xc0   :  { %1147 = vmatpush.msrb.mxu3 %v3020_v0  ;;  %991 = vmatpush.msrb.mxu0 %v3023_v1  ;;  %v4239_v0 = vand.u32 4294901760, %v3194_v45  ;;  %v3216_v1 = vsub.f32 %v407_v40, %v3196_v47  ;;  %v3230_v7 = vsub.f32 %v405_v44, %v3207_v54  ;;  %v4232_v40 = vand.u32 4294901760, %v3271_v27  ;;  %v389_v44 = vld [vmem:[#allocation2 + $0x58] sm:$0xff] }
  0xc1   :  { %964 = vmatmul.f32.vlgmr.msra.gmra.mxu3 %v3140_v34  ;;  %1045 = vmatpush.msrb.mxu1 %v3050_v17  ;;  %v1223_v23 = vsub.f32 %v3205_v53, %v4237_v6 }
  0xc2   :  { %1104 = vmatpush.msrb.mxu2 %v4256_v24  ;;  %1149 = vmatpush.msrb.mxu3 %v3029_v8  ;;  %v1211_v8 = vsub.f32 %v3184_v37, %v4240_v50  ;;  %v4236_v32 = vand.u32 4294901760, %v3216_v1  ;;  %v4235_v62 = vand.u32 4294901760, %v3230_v7 }
  0xc3   :  { %994 = vmatpush.msrb.mxu0 %v3032_v13  ;;  %1047 = vmatpush.msrb.mxu1 %v3060_v5  ;;  %v3232_v13 = vand.u32 4294901760, %v401_v14  ;;  %v1224_v18 = vand.u32 4294901760, %v1223_v23 }
  0xc4   :  { %1108 = vmatpush.msrb.mxu2 %v4257_v58  ;;  %1151 = vmatpush.msrb.mxu3 %v3037_v9  ;;  %v1217_v9 = vsub.f32 %v3194_v45, %v4239_v0  ;;  %v1229_v16 = vsub.f32 %v3216_v1, %v4236_v32  ;;  %v1235_v48 = vsub.f32 %v3230_v7, %v4235_v62  ;;  %v431_v62 = vld [vmem:[#allocation2 + $0x1a8] sm:$0xff]  ;;  %v425_v32 = vld [vmem:[#allocation2 + $0x178] sm:$0xff] }
  0xc5   :  { %997 = vmatpush.msrb.mxu0 %v3040_v29  ;;  %1049 = vmatpush.msrb.mxu1 %v3069_v28  ;;  %v3248_v29 = vsub.f32 %v403_v63, %v3220_v39  ;;  %v3258_v10 = vsub.f32 %v401_v14, %v3232_v13  ;;  %v3301_v14 = vand.u32 4294901760, %v391_v52  ;;  %v3311_v58 = vsub.f32 %v393_v22, %v3289_v61 }
  0xc6   :  { %1112 = vmatpush.msrb.mxu2 %v4258_v31  ;;  %1153 = vmatpush.msrb.mxu3 %v3050_v17  ;;  %v1212_v17 = vand.u32 4294901760, %v1211_v8  ;;  %v1230_v33 = vand.u32 4294901760, %v1229_v16  ;;  %v1236_v24 = vand.u32 4294901760, %v1235_v48  ;;  %v3313_v8 = vand.u32 4294901760, %v389_v44 }
  0xc7   :  { %1000 = vmatpush.msrb.mxu0 %v3053_v46  ;;  %1051 = vmatpush.msrb.mxu1 %v3077_v26  ;;  %v395_v46 = vld [vmem:[#allocation2 + $0x88] sm:$0xff]  ;;  %v4233_v25 = vand.u32 4294901760, %v3258_v10  ;;  %v1253_v31 = vsub.f32 %v3271_v27, %v4232_v40  ;;  %v3457_v0 = vand.u32 4294901760, %v431_v62 }
  0xc8   :  { %1116 = vmatpush.msrb.mxu2 %v4259_v56  ;;  %1155 = vmatpush.msrb.mxu3 %v3060_v5  ;;  %v1218_v5 = vand.u32 4294901760, %v1217_v9  ;;  %v3276_v36 = vand.u32 4294901760, %v395_v46  ;;  %v385_v9 = vld [vmem:[#allocation2 + $0x38] sm:$0xff]  ;;  %v3335_v16 = vsub.f32 %v389_v44, %v3313_v8 }
  0xc9   :  { %1003 = vmatpush.msrb.mxu0 %v3063_v20  ;;  %1053 = vmatpush.msrb.mxu1 %v3090_v59  ;;  %v4234_v20 = vand.u32 4294901760, %v3248_v29  ;;  %v1247_v57 = vsub.f32 %v3258_v10, %v4233_v25  ;;  %v3337_v22 = vand.u32 4294901760, %v385_v9 }
  0xca   :  { %1120 = vmatpush.msrb.mxu2 %v4260_v15  ;;  %1157 = vmatpush.msrb.mxu3 %v3069_v28  ;;  %v4261_v28 = vand.u32 4294901760, %v3101_v21  ;;  %v3299_v63 = vsub.f32 %v395_v46, %v3276_v36  ;;  %v383_v46 = vld [vmem:[#allocation2 + $0x28] sm:$0xff] }
  0xcb   :  { %1057 = vmatmul.f32.vlgmr.msrb.gmra.mxu1 %v3156_v35  ;;  %1006 = vmatpush.msrb.mxu0 %v3072_v41  ;;  %v3287_v41 = vsub.f32 %v397_v55, %v3262_v60 }
  0xcc   :  { %1213 = vmatpush.msra.mxu1 %v1212_v17  ;;  %1124 = vmatpush.msrb.mxu2 %v4261_v28  ;;  %v4228_v56 = vand.u32 4294901760, %v3299_v63  ;;  %v3323_v17 = vsub.f32 %v391_v52, %v3301_v14  ;;  %v3349_v52 = vand.u32 4294901760, %v383_v46 }
  0xcd   :  { %1159 = vmatpush.msrb.mxu3 %v3077_v26  ;;  %1126 = vmatmul.f32.vlgmr.msrb.gmra.mxu2 %v3140_v34  ;;  %v1241_v26 = vsub.f32 %v3248_v29, %v4234_v20  ;;  %v433_v20 = vld [vmem:[#allocation2 + $0x1b8] sm:$0xff] }
  0xce   :  { %1219 = vmatpush.msra.mxu1 %v1218_v5  ;;  %1311 = vmatpush.msra.mxu2 %v3184_v37  ;;  %v4226_v5 = vand.u32 4294901760, %v3311_v58  ;;  %v1265_v28 = vsub.f32 %v3299_v63, %v4228_v56  ;;  %v439_v56 = vld [vmem:[#allocation2 + $0x1e8] sm:$0xff]  ;;  %v3444_v6 = vand.u32 4294901760, %v433_v20 }
  0xcf   :  { %1009 = vmatpush.msrb.mxu0 %v3080_v30  ;;  %1161 = vmatpush.msrb.mxu3 %v3090_v59  ;;  %v387_v30 = vld [vmem:[#allocation2 + $0x48] sm:$0xff]  ;;  %v4230_v59 = vand.u32 4294901760, %v3287_v41  ;;  %v1242_v55 = vand.u32 4294901760, %v1241_v26  ;;  %v4225_v26 = vand.u32 4294901760, %v3335_v16 }
  0xd0   :  { %1163 = vmatmul.f32.vlgmr.msrb.gmra.mxu3 %v3140_v34  ;;  %1225 = vmatpush.msra.mxu1 %v1224_v18  ;;  %v3325_v23 = vand.u32 4294901760, %v387_v30  ;;  %v4224_v18 = vand.u32 4294901760, %v3323_v17  ;;  %v1271_v44 = vsub.f32 %v3311_v58, %v4226_v5  ;;  %v441_v5 = vld [vmem:[#allocation2 + $0x1f8] sm:$0xff] }
  0xd1   :  { %1314 = vmatpush.msra.mxu2 %v3194_v45  ;;  %1364 = vmatpush.msra.mxu3 %v3168_v12  ;;  %v1259_v15 = vsub.f32 %v3287_v41, %v4230_v59  ;;  %v437_v59 = vld [vmem:[#allocation2 + $0x1d8] sm:$0xff] }
  0xd2   :  { %1012 = vmatpush.msrb.mxu0 %v3093_v3  ;;  %1231 = vmatpush.msra.mxu1 %v1230_v33  ;;  %v1248_v3 = vand.u32 4294901760, %v1247_v57  ;;  %v3347_v48 = vsub.f32 %v387_v30, %v3325_v23  ;;  %v1266_v57 = vand.u32 4294901760, %v1265_v28  ;;  %v1277_v30 = vsub.f32 %v3323_v17, %v4224_v18 }
  0xd3   :  { %1317 = vmatpush.msra.mxu2 %v3205_v53  ;;  %1366 = vmatpush.msra.mxu3 %v3176_v2  ;;  %v1260_v33 = vand.u32 4294901760, %v1259_v15  ;;  %v1283_v15 = vsub.f32 %v3335_v16, %v4225_v26 }
  0xd4   :  { %1015 = vmatpush.msrb.mxu0 %v3101_v21  ;;  %1237 = vmatpush.msra.mxu1 %v1236_v24  ;;  %v1254_v21 = vand.u32 4294901760, %v1253_v31  ;;  %v3359_v24 = vsub.f32 %v385_v9, %v3337_v22  ;;  %v4227_v31 = vand.u32 4294901760, %v3347_v48  ;;  %v445_v9 = vld [vmem:[#allocation2 + $0x218] sm:$0xff]  ;;  %v1278_v28 = vand.u32 4294901760, %v1277_v30 }
  0xd5   :  { %1018 = vmatmul.f32.vlgmr.msrb.gmra.mxu0 %v3148_v11  ;;  %1320 = vmatpush.msra.mxu2 %v3216_v1  ;;  %v3385_v18 = vand.u32 4294901760, %v445_v9  ;;  %v1284_v26 = vand.u32 4294901760, %v1283_v15 }
  0xd6   :  { %1168 = vmatpush.msra.mxu0 %v3168_v12  ;;  %1368 = vmatpush.msra.mxu3 %v3186_v38 }
  0xd7   :  { %1243 = vmatpush.msra.mxu1 %v1242_v55  ;;  %1323 = vmatpush.msra.mxu2 %v3230_v7  ;;  %v3369_v55 = vsub.f32 %v383_v46, %v3349_v52  ;;  %v443_v46 = vld [vmem:[#allocation2 + $0x208] sm:$0xff]  ;;  %v3402_v15 = vsub.f32 %v445_v9, %v3385_v18  ;;  %v3414_v9 = vand.u32 4294901760, %v439_v56 }
  0xd8   :  { %1170 = vmatpush.msra.mxu0 %v3176_v2  ;;  %1370 = vmatpush.msra.mxu3 %v3196_v47  ;;  %v3393_v30 = vand.u32 4294901760, %v443_v46 }
  0xd9   :  { %1249 = vmatpush.msra.mxu1 %v1248_v3  ;;  %1326 = vmatpush.msra.mxu2 %v3248_v29  ;;  %4262 = vst [vmem:[#allocation10_spill] sm:$0xff] %v3369_v55  ;;  %v1272_v3 = vand.u32 4294901760, %v1271_v44  ;;  %v4231_v44 = vand.u32 4294901760, %v3369_v55  ;;  %v4238_v25 = vand.u32 4294901760, %v3402_v15 }
  0xda   :  { %1172 = vmatpush.msra.mxu0 %v3186_v38  ;;  %1372 = vmatpush.msra.mxu3 %v3207_v54 }
  0xdb   :  { %1255 = vmatpush.msra.mxu1 %v1254_v21  ;;  %1329 = vmatpush.msra.mxu2 %v3258_v10  ;;  %v4229_v21 = vand.u32 4294901760, %v3359_v24 }
  0xdc   :  { %1174 = vmatpush.msra.mxu0 %v3196_v47  ;;  %1374 = vmatpush.msra.mxu3 %v3220_v39 }
  0xdd   :  { %1261 = vmatpush.msra.mxu1 %v1260_v33  ;;  %1332 = vmatpush.msra.mxu2 %v3271_v27  ;;  %v1289_v33 = vsub.f32 %v3347_v48, %v4227_v31 }
  0xde   :  { %1176 = vmatpush.msra.mxu0 %v3207_v54  ;;  %1376 = vmatpush.msra.mxu3 %v3232_v13 }
  0xdf   :  { %1267 = vmatpush.msra.mxu1 %v1266_v57  ;;  %1335 = vmatpush.msra.mxu2 %v3287_v41  ;;  %v1295_v57 = vsub.f32 %v3359_v24, %v4229_v21  ;;  %v1290_v31 = vand.u32 4294901760, %v1289_v33  ;;  %v3406_v21 = vand.u32 4294901760, %v441_v5  ;;  %v3410_v33 = vsub.f32 %v443_v46, %v3393_v30 }
  0xe0   :  { %1178 = vmatpush.msra.mxu0 %v3220_v39  ;;  %1378 = vmatpush.msra.mxu3 %v3243_v51 }
  0xe1   :  { %1273 = vmatpush.msra.mxu1 %v1272_v3  ;;  %1338 = vmatpush.msra.mxu2 %v3299_v63  ;;  %v1301_v3 = vsub.f32 %v3369_v55, %v4231_v44  ;;  %v435_v44 = vld [vmem:[#allocation2 + $0x1c8] sm:$0xff]  ;;  %v3423_v46 = vsub.f32 %v441_v5, %v3406_v21  ;;  %v1552_v5 = vsub.f32 %v3402_v15, %v4238_v25 }
  0xe2   :  { %1180 = vmatpush.msra.mxu0 %v3232_v13  ;;  %1380 = vmatpush.msra.mxu3 %v3262_v60  ;;  %v3468_v25 = vsub.f32 %v433_v20, %v3444_v6  ;;  %v3481_v20 = vsub.f32 %v431_v62, %v3457_v0 }
  0xe3   :  { %1279 = vmatpush.msra.mxu1 %v1278_v28  ;;  %1341 = vmatpush.msra.mxu2 %v3311_v58  ;;  %v1296_v28 = vand.u32 4294901760, %v1295_v57  ;;  %v1302_v40 = vand.u32 4294901760, %v1301_v3  ;;  %v4241_v57 = vand.u32 4294901760, %v3410_v33  ;;  %v3432_v3 = vsub.f32 %v439_v56, %v3414_v9  ;;  %v429_v56 = vld [vmem:[#allocation2 + $0x198] sm:$0xff] }
  0xe4   :  { %1182 = vmatpush.msra.mxu0 %v3243_v51  ;;  %1382 = vmatpush.msra.mxu3 %v3276_v36  ;;  %v1553_v50 = vand.u32 4294901760, %v1552_v5  ;;  %v3470_v11 = vand.u32 4294901760, %v429_v56 }
  0xe5   :  { %1285 = vmatpush.msra.mxu1 %v1284_v26  ;;  %1344 = vmatpush.msra.mxu2 %v3323_v17  ;;  %v3418_v26 = vand.u32 4294901760, %v437_v59  ;;  %4263 = vst [vmem:[#allocation11_spill] sm:$0xff] %v3432_v3 }
  0xe6   :  { %1184 = vmatpush.msra.mxu0 %v3262_v60  ;;  %1384 = vmatpush.msra.mxu3 %v3289_v61  ;;  %v3493_v62 = vsub.f32 %v429_v56, %v3470_v11 }
  0xe7   :  { %1291 = vmatpush.msra.mxu1 %v1290_v31  ;;  %1347 = vmatpush.msra.mxu2 %v3335_v16  ;;  %v3427_v31 = vand.u32 4294901760, %v435_v44 }
  0xe8   :  { %1186 = vmatpush.msra.mxu0 %v3276_v36  ;;  %1386 = vmatpush.msra.mxu3 %v3301_v14 }
  0xe9   :  { %1297 = vmatpush.msra.mxu1 %v1296_v28  ;;  %1350 = vmatpush.msra.mxu2 %v3347_v48  ;;  %v3439_v28 = vsub.f32 %v437_v59, %v3418_v26  ;;  %v3452_v59 = vsub.f32 %v435_v44, %v3427_v31 }
  0xea   :  { %1188 = vmatpush.msra.mxu0 %v3289_v61  ;;  %1388 = vmatpush.msra.mxu3 %v3313_v8 }
  0xeb   :  { %1303 = vmatpush.msra.mxu1 %v1302_v40  ;;  %1353 = vmatpush.msra.mxu2 %v3359_v24  ;;  %4264 = vst [vmem:[#allocation12_spill] sm:$0xff] %v3439_v28  ;;  %v1558_v40 = vsub.f32 %v3410_v33, %v4241_v57  ;;  %v427_v57 = vld [vmem:[#allocation2 + $0x188] sm:$0xff] }
  0xec   :  { %1190 = vmatpush.msra.mxu0 %v3301_v14  ;;  %1390 = vmatpush.msra.mxu3 %v3325_v23  ;;  %4265 = vst [vmem:[#allocation13_spill] sm:$0xff] %v3452_v59  ;;  %v3483_v35 = vand.u32 4294901760, %v427_v57 }
  0xed   :  { %1305 = vmatmul.f32.vlgmr.msra.gmra.mxu1 %v3110_v4  ;;  %1356 = vmatpush.msra.mxu2 %v3369_v55  ;;  %v423_v55 = vld [vmem:[#allocation2 + $0x168] sm:$0xff] }
  0xee   :  { %1472 = vmatpush.msrb.mxu1 %v3168_v12  ;;  %1192 = vmatpush.msra.mxu0 %v3313_v8  ;;  %v4266_v12 = vand.u32 4294901760, %v3423_v46  ;;  %v3505_v56 = vsub.f32 %v427_v57, %v3483_v35 }
  0xef   :  { %1392 = vmatpush.msra.mxu3 %v3337_v22  ;;  %1359 = vmatmul.f32.vlgmr.msra.gmra.mxu2 %v3113_v43  ;;  %v1559_v43 = vand.u32 4294901760, %v1558_v40  ;;  %v4268_v40 = vand.u32 4294901760, %v3439_v28 }
  0xf0   :  { %1474 = vmatpush.msrb.mxu1 %v3176_v2  ;;  %1509 = vmatpush.msrb.mxu2 %v3385_v18  ;;  %v1564_v44 = vsub.f32 %v3423_v46, %v4266_v12  ;;  %v4267_v2 = vand.u32 4294901760, %v3432_v3 }
  0xf1   :  { %1194 = vmatpush.msra.mxu0 %v3325_v23  ;;  %1394 = vmatpush.msra.mxu3 %v3349_v52  ;;  %v1576_v5 = vsub.f32 %v3439_v28, %v4268_v40  ;;  %v421_v28 = vld [vmem:[#allocation2 + $0x158] sm:$0xff] }
  0xf2   :  { %1398 = vmatmul.f32.vlgmr.msra.gmra.mxu3 %v3119_v49  ;;  %1476 = vmatpush.msrb.mxu1 %v3186_v38  ;;  %v1570_v12 = vsub.f32 %v3432_v3, %v4267_v2  ;;  %v1565_v49 = vand.u32 4294901760, %v1564_v44  ;;  %v3495_v2 = vand.u32 4294901760, %v425_v32  ;;  %v3507_v38 = vand.u32 4294901760, %v423_v55  ;;  %v419_v3 = vld [vmem:[#allocation2 + $0x148] sm:$0xff]  ;;  %v417_v44 = vld [vmem:[#allocation2 + $0x138] sm:$0xff] }
  0xf3   :  { %1511 = vmatpush.msrb.mxu2 %v3393_v30  ;;  %1554 = vmatpush.msrb.mxu3 %v1553_v50  ;;  %v4269_v50 = vand.u32 4294901760, %v3452_v59 }
  0xf4   :  { %1196 = vmatpush.msra.mxu0 %v3337_v22  ;;  %1478 = vmatpush.msrb.mxu1 %v3196_v47  ;;  %v1571_v47 = vand.u32 4294901760, %v1570_v12  ;;  %v3518_v57 = vsub.f32 %v425_v32, %v3495_v2  ;;  %v3531_v32 = vsub.f32 %v423_v55, %v3507_v38 }
  0xf5   :  { %1513 = vmatpush.msrb.mxu2 %v3406_v21  ;;  %1560 = vmatpush.msrb.mxu3 %v1559_v43  ;;  %v1582_v40 = vsub.f32 %v3452_v59, %v4269_v50  ;;  %v1577_v43 = vand.u32 4294901760, %v1576_v5  ;;  %v4270_v50 = vand.u32 4294901760, %v3184_v37  ;;  %v3520_v59 = vand.u32 4294901760, %v421_v28 }
  0xf6   :  { %1198 = vmatpush.msra.mxu0 %v3349_v52  ;;  %1480 = vmatpush.msrb.mxu1 %v3207_v54  ;;  %v4271_v54 = vand.u32 4294901760, %v3468_v25  ;;  %v4272_v37 = vand.u32 4294901760, %v3194_v45  ;;  %v4273_v5 = vand.u32 4294901760, %v3481_v20  ;;  %v4274_v45 = vand.u32 4294901760, %v3205_v53 }
  0xf7   :  { %1204 = vmatmul.f32.vlgmr.msra.gmra.mxu0 %v3131_v42  ;;  %1515 = vmatpush.msrb.mxu2 %v3414_v9  ;;  %v1583_v42 = vand.u32 4294901760, %v1582_v40  ;;  %v4275_v40 = vand.u32 4294901760, %v3493_v62  ;;  %v3544_v55 = vsub.f32 %v421_v28, %v3520_v59  ;;  %v4276_v53 = vand.u32 4294901760, %v3216_v1 }
  0xf8   :  { %1405 = vmatpush.msrb.mxu0 %v4270_v50  ;;  %1566 = vmatpush.msrb.mxu3 %v1565_v49  ;;  %v1588_v12 = vsub.f32 %v3468_v25, %v4271_v54  ;;  %v1594_v49 = vsub.f32 %v3481_v20, %v4273_v5  ;;  %v1605_v50 = vand.u32 4294901760, %v3505_v56  ;;  %v3533_v54 = vand.u32 4294901760, %v419_v3  ;;  %v415_v5 = vld [vmem:[#allocation2 + $0x128] sm:$0xff] }
  0xf9   :  { %1482 = vmatpush.msrb.mxu1 %v3220_v39  ;;  %1517 = vmatpush.msrb.mxu2 %v3418_v26  ;;  %v4277_v1 = vand.u32 4294901760, %v3230_v7 }
  0xfa   :  { %1409 = vmatpush.msrb.mxu0 %v4272_v37  ;;  %1572 = vmatpush.msrb.mxu3 %v1571_v47  ;;  %v1589_v39 = vand.u32 4294901760, %v1588_v12  ;;  %v1600_v47 = vsub.f32 %v3493_v62, %v4275_v40  ;;  %v1611_v37 = vand.u32 4294901760, %v3518_v57  ;;  %v1606_v12 = vsub.f32 %v3505_v56, %v1605_v50 }
  0xfb   :  { %1484 = vmatpush.msrb.mxu1 %v3232_v13  ;;  %1519 = vmatpush.msrb.mxu2 %v3427_v31  ;;  %v3548_v13 = vand.u32 4294901760, %v417_v44  ;;  %v3557_v28 = vsub.f32 %v419_v3, %v3533_v54  ;;  %v1623_v40 = vand.u32 4294901760, %v3544_v55  ;;  %v4278_v3 = vand.u32 4294901760, %v3248_v29 }
  0xfc   :  { %1413 = vmatpush.msrb.mxu0 %v4274_v45  ;;  %1578 = vmatpush.msrb.mxu3 %v1577_v43  ;;  %v1595_v43 = vand.u32 4294901760, %v1594_v49  ;;  %v1617_v45 = vand.u32 4294901760, %v3531_v32  ;;  %v1612_v49 = vsub.f32 %v3518_v57, %v1611_v37  ;;  %v1607_v7 = vand.u32 4294901760, %v1606_v12 }
  0xfd   :  { %1486 = vmatpush.msrb.mxu1 %v3243_v51  ;;  %1521 = vmatpush.msrb.mxu2 %v3444_v6  ;;  %v3561_v51 = vand.u32 4294901760, %v415_v5 }
  0xfe   :  { %1417 = vmatpush.msrb.mxu0 %v4276_v53  ;;  %1584 = vmatpush.msrb.mxu3 %v1583_v42  ;;  %v1601_v42 = vand.u32 4294901760, %v1600_v47  ;;  %v1629_v47 = vand.u32 4294901760, %v3557_v28  ;;  %v1613_v29 = vand.u32 4294901760, %v1612_v49  ;;  %v1624_v53 = vsub.f32 %v3544_v55, %v1623_v40 }
  0xff   :  { %1488 = vmatpush.msrb.mxu1 %v3262_v60  ;;  %1523 = vmatpush.msrb.mxu2 %v3457_v0  ;;  %v3572_v60 = vsub.f32 %v417_v44, %v3548_v13  ;;  %v4279_v44 = vand.u32 4294901760, %v3258_v10  ;;  %v4284_v49 = vand.u32 4294901760, %v3323_v17  ;;  %v4287_v17 = vand.u32 4294901760, %v3347_v48  ;;  %v4291_v48 = vld [vmem:[#allocation10_spill] sm:$0xff] }
 0x100   :  { %1421 = vmatpush.msrb.mxu0 %v4277_v1  ;;  %1590 = vmatpush.msrb.mxu3 %v1589_v39  ;;  %v1618_v39 = vsub.f32 %v3531_v32, %v1617_v45  ;;  %v1630_v10 = vsub.f32 %v3557_v28, %v1629_v47  ;;  %v1625_v1 = vand.u32 4294901760, %v1624_v53 }
 0x101   :  { %1490 = vmatpush.msrb.mxu1 %v3276_v36  ;;  %1525 = vmatpush.msrb.mxu2 %v3470_v11  ;;  %v3583_v36 = vsub.f32 %v415_v5, %v3561_v51 }
 0x102   :  { %1425 = vmatpush.msrb.mxu0 %v4278_v3  ;;  %1596 = vmatpush.msrb.mxu3 %v1595_v43  ;;  %v4280_v43 = vand.u32 4294901760, %v3271_v27  ;;  %v1619_v5 = vand.u32 4294901760, %v1618_v39  ;;  %v4288_v3 = vand.u32 4294901760, %v3410_v33  ;;  %v4293_v39 = vld [vmem:[#allocation11_spill] sm:$0xff] }
 0x103   :  { %1492 = vmatpush.msrb.mxu1 %v3289_v61  ;;  %1527 = vmatpush.msrb.mxu2 %v3483_v35  ;;  %v1635_v61 = vand.u32 4294901760, %v3572_v60  ;;  %v1641_v12 = vand.u32 4294901760, %v3583_v36 }
 0x104   :  { %1429 = vmatpush.msrb.mxu0 %v4279_v44  ;;  %1602 = vmatpush.msrb.mxu3 %v1601_v42  ;;  %v4282_v42 = vand.u32 4294901760, %v3299_v63  ;;  %v4294_v44 = vand.u32 4294901760, %v4293_v39 }
 0x105   :  { %1494 = vmatpush.msrb.mxu1 %v3301_v14  ;;  %1529 = vmatpush.msrb.mxu2 %v3495_v2  ;;  %v4281_v14 = vand.u32 4294901760, %v3287_v41  ;;  %v1636_v27 = vsub.f32 %v3572_v60, %v1635_v61  ;;  %v1642_v41 = vsub.f32 %v3583_v36, %v1641_v12 }
 0x106   :  { %1433 = vmatpush.msrb.mxu0 %v4280_v43  ;;  %1608 = vmatpush.msrb.mxu3 %v1607_v7  ;;  %v4292_v7 = vand.u32 4294901760, %v4291_v48  ;;  %v4301_v43 = vand.u32 4294901760, %v3493_v62  ;;  %v450_v48 = vld [vmem:[#allocation2 + $0x260] sm:$0xff] }
 0x107   :  { %1496 = vmatpush.msrb.mxu1 %v3313_v8  ;;  %1531 = vmatpush.msrb.mxu2 %v3507_v38  ;;  %v1631_v8 = vand.u32 4294901760, %v1630_v10  ;;  %v1637_v63 = vand.u32 4294901760, %v1636_v27  ;;  %v457_v10 = vld [vmem:[#allocation2 + $0x2d0] sm:$0xff] }
 0x108   :  { %1437 = vmatpush.msrb.mxu0 %v4281_v14  ;;  %1614 = vmatpush.msrb.mxu3 %v1613_v29 }
 0x109   :  { %1498 = vmatpush.msrb.mxu1 %v3325_v23  ;;  %1533 = vmatpush.msrb.mxu2 %v3520_v59  ;;  %v4283_v23 = vand.u32 4294901760, %v3311_v58  ;;  %v4285_v58 = vand.u32 4294901760, %v3335_v16  ;;  %v4290_v16 = vand.u32 4294901760, %v3423_v46 }
 0x10a   :  { %1441 = vmatpush.msrb.mxu0 %v4282_v42  ;;  %1620 = vmatpush.msrb.mxu3 %v1619_v5  ;;  %v455_v42 = vld [vmem:[#allocation2 + $0x2b0] sm:$0xff] }
 0x10b   :  { %1500 = vmatpush.msrb.mxu1 %v3337_v22  ;;  %1535 = vmatpush.msrb.mxu2 %v3533_v54  ;;  %v1643_v22 = vand.u32 4294901760, %v1642_v41 }
 0x10c   :  { %1445 = vmatpush.msrb.mxu0 %v4283_v23  ;;  %1626 = vmatpush.msrb.mxu3 %v1625_v1  ;;  %v456_v1 = vld [vmem:[#allocation2 + $0x2c0] sm:$0xff]  ;;  %v453_v23 = vld [vmem:[#allocation2 + $0x290] sm:$0xff] }
 0x10d   :  { %1502 = vmatpush.msrb.mxu1 %v3349_v52  ;;  %1537 = vmatpush.msrb.mxu2 %v3548_v13  ;;  %v4286_v52 = vand.u32 4294901760, %v3402_v15 }
 0x10e   :  { %1449 = vmatpush.msrb.mxu0 %v4284_v49  ;;  %1632 = vmatpush.msrb.mxu3 %v1631_v8  ;;  %v454_v8 = vld [vmem:[#allocation2 + $0x2a0] sm:$0xff] }
 0x10f   :  { %1504 = vmatmul.f32.vlgmr.msrb.gmra.mxu1 %v3110_v4  ;;  %1539 = vmatpush.msrb.mxu2 %v3561_v51  ;;  %v452_v49 = vld [vmem:[#allocation2 + $0x280] sm:$0xff] }
 0x110   :  { %1705 = vmatpush.msra.mxu1 %v3385_v18  ;;  %1453 = vmatpush.msrb.mxu0 %v4285_v58 }
 0x111   :  { %1638 = vmatpush.msrb.mxu3 %v1637_v63  ;;  %1545 = vmatmul.f32.vlgmr.msrb.gmra.mxu2 %v3174_v19  ;;  %v4289_v19 = vand.u32 4294901760, %v3359_v24 }
 0x112   :  { %1707 = vmatpush.msra.mxu1 %v3393_v30  ;;  %1746 = vmatpush.msra.mxu2 %v4286_v52  ;;  %v451_v52 = vld [vmem:[#allocation2 + $0x270] sm:$0xff] }
 0x113   :  { %1457 = vmatpush.msrb.mxu0 %v4287_v17  ;;  %1644 = vmatpush.msrb.mxu3 %v1643_v22  ;;  %v4302_v17 = vld [vmem:[#allocation9_spill] sm:$0xff] }
 0x114   :  { %1646 = vmatmul.f32.vlgmr.msrb.gmra.mxu3 %v3140_v34  ;;  %1709 = vmatpush.msra.mxu1 %v3406_v21 }
 0x115   :  { %1750 = vmatpush.msra.mxu2 %v4288_v3  ;;  %1813 = vmatpush.msra.mxu3 %v3385_v18  ;;  %v4295_v18 = vld [vmem:[#allocation12_spill] sm:$0xff] }
 0x116   :  { %1461 = vmatpush.msrb.mxu0 %v4289_v19  ;;  %1711 = vmatpush.msra.mxu1 %v3414_v9  ;;  %v4296_v24 = vand.u32 4294901760, %v4295_v18  ;;  %v3771_v19 = vand.u32 4294901760, %v452_v49 }
 0x117   :  { %1754 = vmatpush.msra.mxu2 %v4290_v16  ;;  %1815 = vmatpush.msra.mxu3 %v3393_v30  ;;  %v461_v30 = vld [vmem:[#allocation2 + $0x310] sm:$0xff] }
 0x118   :  { %1465 = vmatpush.msrb.mxu0 %v4292_v7  ;;  %1713 = vmatpush.msra.mxu1 %v3418_v26  ;;  %v3664_v53 = vand.u32 4294901760, %v461_v30 }
 0x119   :  { %1467 = vmatmul.f32.vlgmr.msrb.gmra.mxu0 %v3110_v4  ;;  %1758 = vmatpush.msra.mxu2 %v4294_v44  ;;  %v4297_v4 = vld [vmem:[#allocation13_spill] sm:$0xff]  ;;  %v3784_v44 = vand.u32 4294901760, %v451_v52 }
 0x11a   :  { %1652 = vmatpush.msra.mxu0 %v3402_v15  ;;  %1817 = vmatpush.msra.mxu3 %v3406_v21  ;;  %v4298_v29 = vand.u32 4294901760, %v4297_v4  ;;  %v460_v21 = vld [vmem:[#allocation2 + $0x300] sm:$0xff]  ;;  %v4299_v15 = vand.u32 4294901760, %v3468_v25 }
 0x11b   :  { %1715 = vmatpush.msra.mxu1 %v3427_v31  ;;  %1762 = vmatpush.msra.mxu2 %v4296_v24 }
 0x11c   :  { %1655 = vmatpush.msra.mxu0 %v3410_v33  ;;  %1819 = vmatpush.msra.mxu3 %v3414_v9  ;;  %v459_v33 = vld [vmem:[#allocation2 + $0x2f0] sm:$0xff]  ;;  %v4300_v9 = vand.u32 4294901760, %v3481_v20 }
 0x11d   :  { %1717 = vmatpush.msra.mxu1 %v3444_v6  ;;  %1766 = vmatpush.msra.mxu2 %v4298_v29  ;;  %v3681_v5 = vand.u32 4294901760, %v459_v33  ;;  %v3796_v29 = vand.u32 4294901760, %v450_v48 }
 0x11e   :  { %1658 = vmatpush.msra.mxu0 %v3423_v46  ;;  %1821 = vmatpush.msra.mxu3 %v3418_v26  ;;  %v3671_v46 = vand.u32 4294901760, %v460_v21  ;;  %v458_v26 = vld [vmem:[#allocation2 + $0x2e0] sm:$0xff] }
 0x11f   :  { %1719 = vmatpush.msra.mxu1 %v3457_v0  ;;  %1770 = vmatpush.msra.mxu2 %v4299_v15  ;;  %v3691_v14 = vand.u32 4294901760, %v458_v26  ;;  %v3700_v27 = vsub.f32 %v459_v33, %v3681_v5  ;;  %v3805_v33 = vsub.f32 %v451_v52, %v3784_v44 }
 0x120   :  { %1661 = vmatpush.msra.mxu0 %v4293_v39  ;;  %1823 = vmatpush.msra.mxu3 %v3427_v31  ;;  %v3679_v31 = vsub.f32 %v461_v30, %v3664_v53 }
 0x121   :  { %1721 = vmatpush.msra.mxu1 %v3470_v11  ;;  %1774 = vmatpush.msra.mxu2 %v4300_v9 }
 0x122   :  { %1664 = vmatpush.msra.mxu0 %v4295_v18  ;;  %1825 = vmatpush.msra.mxu3 %v3444_v6  ;;  %v3689_v6 = vsub.f32 %v460_v21, %v3671_v46  ;;  %v449_v18 = vld [vmem:[#allocation2 + $0x250] sm:$0xff] }
 0x123   :  { %1723 = vmatpush.msra.mxu1 %v3483_v35  ;;  %1778 = vmatpush.msra.mxu2 %v4301_v43  ;;  %v3807_v9 = vand.u32 4294901760, %v449_v18  ;;  %v4303_v43 = vld [vmem:[#allocation8_spill] sm:$0xff] }
 0x124   :  { %1667 = vmatpush.msra.mxu0 %v4297_v4  ;;  %1827 = vmatpush.msra.mxu3 %v3457_v0  ;;  %v1896_v0 = vand.u32 4294901760, %v3679_v31  ;;  %v3794_v4 = vsub.f32 %v452_v49, %v3771_v19 }
 0x125   :  { %1725 = vmatpush.msra.mxu1 %v3495_v2  ;;  %1782 = vmatpush.msra.mxu2 %v1605_v50  ;;  %v3702_v50 = vand.u32 4294901760, %v457_v10 }
 0x126   :  { %1670 = vmatpush.msra.mxu0 %v3468_v25  ;;  %1829 = vmatpush.msra.mxu3 %v3470_v11  ;;  %v1902_v11 = vand.u32 4294901760, %v3689_v6  ;;  %v3711_v25 = vsub.f32 %v458_v26, %v3691_v14  ;;  %v447_v26 = vld [vmem:[#allocation2 + $0x230] sm:$0xff] }
 0x127   :  { %1727 = vmatpush.msra.mxu1 %v3507_v38  ;;  %1786 = vmatpush.msra.mxu2 %v1611_v37  ;;  %v3713_v37 = vand.u32 4294901760, %v456_v1  ;;  %v3727_v41 = vsub.f32 %v457_v10, %v3702_v50  ;;  %v3831_v52 = vand.u32 4294901760, %v447_v26 }
 0x128   :  { %1673 = vmatpush.msra.mxu0 %v3481_v20  ;;  %1831 = vmatpush.msra.mxu3 %v3483_v35  ;;  %v3717_v20 = vand.u32 4294901760, %v455_v42  ;;  %v1897_v35 = vsub.f32 %v3679_v31, %v1896_v0 }
 0x129   :  { %1729 = vmatpush.msra.mxu1 %v3520_v59  ;;  %1790 = vmatpush.msra.mxu2 %v1617_v45  ;;  %v1908_v45 = vand.u32 4294901760, %v3700_v27  ;;  %v3741_v63 = vsub.f32 %v456_v1, %v3713_v37  ;;  %v1950_v1 = vand.u32 4294901760, %v3794_v4 }
 0x12a   :  { %1676 = vmatpush.msra.mxu0 %v3493_v62  ;;  %1833 = vmatpush.msra.mxu3 %v3495_v2  ;;  %v3731_v62 = vand.u32 4294901760, %v454_v8  ;;  %v1903_v2 = vsub.f32 %v3689_v6, %v1902_v11 }
 0x12b   :  { %1731 = vmatpush.msra.mxu1 %v3533_v54  ;;  %1794 = vmatpush.msra.mxu2 %v1623_v40  ;;  %v1914_v40 = vand.u32 4294901760, %v3711_v25  ;;  %v1909_v22 = vsub.f32 %v3700_v27, %v1908_v45 }
 0x12c   :  { %1679 = vmatpush.msra.mxu0 %v3505_v56  ;;  %1835 = vmatpush.msra.mxu3 %v3507_v38  ;;  %v3746_v38 = vsub.f32 %v455_v42, %v3717_v20  ;;  %v3748_v56 = vand.u32 4294901760, %v453_v23  ;;  %v3762_v58 = vsub.f32 %v454_v8, %v3731_v62  ;;  %v3818_v42 = vsub.f32 %v450_v48, %v3796_v29 }
 0x12d   :  { %1733 = vmatpush.msra.mxu1 %v3548_v13  ;;  %1798 = vmatpush.msra.mxu2 %v1629_v47  ;;  %v1898_v47 = vand.u32 4294901760, %v1897_v35  ;;  %v1915_v3 = vsub.f32 %v3711_v25, %v1914_v40  ;;  %v624_v35 = vpop.f32.mrf.mxu1 }
 0x12e   :  { %1682 = vmatpush.msra.mxu0 %v3518_v57  ;;  %1837 = vmatpush.msra.mxu3 %v3520_v59  ;;  %v1920_v57 = vand.u32 4294901760, %v3727_v41  ;;  %v3759_v59 = vld [vmem:[#allocation4 + $0x1] ss:$8 sm:$0x3]  ;;  %v3777_v16 = vsub.f32 %v453_v23, %v3748_v56 }
 0x12f   :  { %1735 = vmatpush.msra.mxu1 %v3561_v51  ;;  %1802 = vmatpush.msra.mxu2 %v1635_v61  ;;  %v1904_v61 = vand.u32 4294901760, %v1903_v2  ;;  %v481_v7 = vperm.slane %v3759_v59, 0  ;;  %v1916_v24 = vand.u32 4294901760, %v1915_v3  ;;  %v446_v2 = vld [vmem:[#allocation2 + $0x220] sm:$0xff]  ;;  %v1962_v3 = vand.u32 4294901760, %v3818_v42 }
 0x130   :  { %1685 = vmatpush.msra.mxu0 %v3531_v32  ;;  %1839 = vmatpush.msra.mxu3 %v3533_v54  ;;  %v1926_v32 = vand.u32 4294901760, %v3741_v63  ;;  %v1932_v54 = vand.u32 4294901760, %v3746_v38  ;;  %v1921_v39 = vsub.f32 %v3727_v41, %v1920_v57 }
 0x131   :  { %1739 = vmatmul.f32.vlgmr.msra.gmra.mxu1 %v4302_v17  ;;  %1806 = vmatpush.msra.mxu2 %v1641_v12  ;;  %v1910_v12 = vand.u32 4294901760, %v1909_v22  ;;  %v3829_v22 = vsub.f32 %v449_v18, %v3807_v9 }
 0x132   :  { %1688 = vmatpush.msra.mxu0 %v3544_v55  ;;  %1841 = vmatpush.msra.mxu3 %v3548_v13  ;;  %v523_v55 = vpop.f32.mrf.mxu0  ;;  %v1938_v13 = vand.u32 4294901760, %v3762_v58  ;;  %v1927_v30 = vsub.f32 %v3741_v63, %v1926_v32  ;;  %v1922_v15 = vand.u32 4294901760, %v1921_v39 }
 0x133   :  { %1899 = vmatpush.msrb.mxu1 %v1898_v47  ;;  %1808 = vmatmul.f32.vlgmr.msra.gmra.mxu2 %v3140_v34  ;;  %v524_v21 = vadd.f32 %v523_v55, %v481_v7  ;;  %v1956_v47 = vand.u32 4294901760, %v3805_v33  ;;  %v678_v7 = vpop.f32.mrf.mxu2 }
 0x134   :  { %1691 = vmatpush.msra.mxu0 %v3557_v28  ;;  %1843 = vmatpush.msra.mxu3 %v3561_v51  ;;  %v1933_v28 = vsub.f32 %v3746_v38, %v1932_v54  ;;  %v1944_v51 = vand.u32 4294901760, %v3777_v16  ;;  %v1928_v10 = vand.u32 4294901760, %v1927_v30  ;;  %v3853_v30 = vsub.f32 %v447_v26, %v3831_v52 }
 0x135   :  { %1905 = vmatpush.msrb.mxu1 %v1904_v61  ;;  %1845 = vmatmul.f32.vlgmr.msra.gmra.mxu3 %v3140_v34  ;;  %v448_v34 = vld [vmem:[#allocation2 + $0x240] sm:$0xff]  ;;  %v625_v49 = vadd.f32 %v624_v35, %v524_v21  ;;  %v1951_v61 = vsub.f32 %v3794_v4, %v1950_v1  ;;  %v1957_v18 = vsub.f32 %v3805_v33, %v1956_v47 }
 0x136   :  { %1694 = vmatpush.msra.mxu0 %v3572_v60  ;;  %1997 = vmatpush.msrb.mxu2 %v3679_v31  ;;  %v1939_v60 = vsub.f32 %v3762_v58, %v1938_v13  ;;  %v3820_v8 = vand.u32 4294901760, %v448_v34  ;;  %v1945_v23 = vsub.f32 %v3777_v16, %v1944_v51  ;;  %v1980_v35 = vand.u32 4294901760, %v3853_v30 }
 0x137   :  { %1911 = vmatpush.msrb.mxu1 %v1910_v12  ;;  %2050 = vmatpush.msrb.mxu3 %v3664_v53  ;;  %v3843_v12 = vand.u32 4294901760, %v446_v2  ;;  %v679_v55 = vadd.f32 %v678_v7, %v625_v49 }
 0x138   :  { %1697 = vmatpush.msra.mxu0 %v3583_v36  ;;  %2000 = vmatpush.msrb.mxu2 %v3689_v6  ;;  %v1934_v36 = vand.u32 4294901760, %v1933_v28  ;;  %v1940_v17 = vand.u32 4294901760, %v1939_v60  ;;  %v3841_v48 = vsub.f32 %v448_v34, %v3820_v8  ;;  %v1946_v39 = vand.u32 4294901760, %v1945_v23  ;;  %v717_v60 = vpop.f32.mrf.mxu3 }
 0x139   :  { %1917 = vmatpush.msrb.mxu1 %v1916_v24  ;;  %1700 = vmatmul.f32.vlgmr.msra.gmra.mxu0 %v4303_v43  ;;  %v1968_v24 = vand.u32 4294901760, %v3829_v22  ;;  %v1952_v28 = vand.u32 4294901760, %v1951_v61  ;;  %v1963_v34 = vsub.f32 %v3818_v42, %v1962_v3  ;;  %v718_v26 = vadd.f32 %v717_v60, %v679_v55 }
 0x13a   :  { %1854 = vmatpush.msrb.mxu0 %v3664_v53  ;;  %2003 = vmatpush.msrb.mxu2 %v3700_v27  ;;  %v1974_v21 = vand.u32 4294901760, %v3841_v48  ;;  %v1958_v43 = vand.u32 4294901760, %v1957_v18  ;;  %v1981_v7 = vsub.f32 %v3853_v30, %v1980_v35  ;;  %v823_v18 = vpop.f32.mrf.mxu1  ;;  %v477_v27 = vld [vmem:[#allocation2 + $0x410] sm:$0xff] }
 0x13b   :  { %1923 = vmatpush.msrb.mxu1 %v1922_v15  ;;  %2052 = vmatpush.msrb.mxu3 %v3671_v46  ;;  %v3863_v15 = vsub.f32 %v446_v2, %v3843_v12  ;;  %v1964_v23 = vand.u32 4294901760, %v1963_v34 }
 0x13c   :  { %1856 = vmatpush.msrb.mxu0 %v3671_v46  ;;  %2006 = vmatpush.msrb.mxu2 %v3711_v25  ;;  %v1975_v2 = vsub.f32 %v3841_v48, %v1974_v21  ;;  %v1982_v60 = vand.u32 4294901760, %v1981_v7  ;;  %v476_v25 = vld [vmem:[#allocation2 + $0x400] sm:$0xff] }
 0x13d   :  { %1929 = vmatpush.msrb.mxu1 %v1928_v10  ;;  %2054 = vmatpush.msrb.mxu3 %v3681_v5  ;;  %v1969_v10 = vsub.f32 %v3829_v22, %v1968_v24  ;;  %v1986_v49 = vand.u32 4294901760, %v3863_v15 }
 0x13e   :  { %1858 = vmatpush.msrb.mxu0 %v3681_v5  ;;  %2009 = vmatpush.msrb.mxu2 %v3727_v41 }
 0x13f   :  { %1935 = vmatpush.msrb.mxu1 %v1934_v36  ;;  %2056 = vmatpush.msrb.mxu3 %v3691_v14  ;;  %v786_v36 = vpop.f32.mrf.mxu0  ;;  %v1970_v61 = vand.u32 4294901760, %v1969_v10  ;;  %v1987_v55 = vsub.f32 %v3863_v15, %v1986_v49 }
 0x140   :  { %1860 = vmatpush.msrb.mxu0 %v3691_v14  ;;  %2012 = vmatpush.msrb.mxu2 %v3741_v63  ;;  %v474_v63 = vld [vmem:[#allocation2 + $0x3e0] sm:$0xff] }
 0x141   :  { %1941 = vmatpush.msrb.mxu1 %v1940_v17  ;;  %2058 = vmatpush.msrb.mxu3 %v3702_v50  ;;  %v787_v17 = vadd.f32 %v786_v36, %v718_v26 }
 0x142   :  { %1862 = vmatpush.msrb.mxu0 %v3702_v50  ;;  %2015 = vmatpush.msrb.mxu2 %v3746_v38 }
 0x143   :  { %1947 = vmatpush.msrb.mxu1 %v1946_v39  ;;  %2060 = vmatpush.msrb.mxu3 %v3713_v37  ;;  %v1976_v39 = vand.u32 4294901760, %v1975_v2  ;;  %v824_v34 = vadd.f32 %v823_v18, %v787_v17 }
 0x144   :  { %1864 = vmatpush.msrb.mxu0 %v3713_v37  ;;  %2018 = vmatpush.msrb.mxu2 %v3762_v58  ;;  %v965_v10 = vpop.f32.mrf.mxu3  ;;  %v3973_v58 = vand.u32 4294901760, %v474_v63 }
 0x145   :  { %1953 = vmatpush.msrb.mxu1 %v1952_v28  ;;  %2062 = vmatpush.msrb.mxu3 %v3717_v20  ;;  %v864_v28 = vpop.f32.mrf.mxu2 }
 0x146   :  { %1866 = vmatpush.msrb.mxu0 %v3717_v20  ;;  %2021 = vmatpush.msrb.mxu2 %v3777_v16  ;;  %v865_v26 = vadd.f32 %v864_v28, %v824_v34 }
 0x147   :  { %1959 = vmatpush.msrb.mxu1 %v1958_v43  ;;  %2064 = vmatpush.msrb.mxu3 %v3731_v62  ;;  %v1988_v43 = vand.u32 4294901760, %v1987_v55 }
 0x148   :  { %1868 = vmatpush.msrb.mxu0 %v3731_v62  ;;  %2024 = vmatpush.msrb.mxu2 %v3794_v4  ;;  %v966_v36 = vadd.f32 %v965_v10, %v865_v26  ;;  %v1058_v17 = vpop.f32.mrf.mxu1  ;;  %v472_v4 = vld [vmem:[#allocation2 + $0x3c0] sm:$0xff] }
 0x149   :  { %1965 = vmatpush.msrb.mxu1 %v1964_v23  ;;  %2066 = vmatpush.msrb.mxu3 %v3748_v56 }
 0x14a   :  { %1870 = vmatpush.msrb.mxu0 %v3748_v56  ;;  %2027 = vmatpush.msrb.mxu2 %v3805_v33 }
 0x14b   :  { %1971 = vmatpush.msrb.mxu1 %v1970_v61  ;;  %2068 = vmatpush.msrb.mxu3 %v3771_v19 }
 0x14c   :  { %1872 = vmatpush.msrb.mxu0 %v3771_v19  ;;  %2030 = vmatpush.msrb.mxu2 %v3818_v42  ;;  %v471_v42 = vld [vmem:[#allocation2 + $0x3b0] sm:$0xff] }
 0x14d   :  { %1977 = vmatpush.msrb.mxu1 %v1976_v39  ;;  %2070 = vmatpush.msrb.mxu3 %v3784_v44 }
 0x14e   :  { %1874 = vmatpush.msrb.mxu0 %v3784_v44  ;;  %2033 = vmatpush.msrb.mxu2 %v3829_v22 }
 0x14f   :  { %1983 = vmatpush.msrb.mxu1 %v1982_v60  ;;  %2072 = vmatpush.msrb.mxu3 %v3796_v29 }
 0x150   :  { %1876 = vmatpush.msrb.mxu0 %v3796_v29  ;;  %2036 = vmatpush.msrb.mxu2 %v3841_v48 }
 0x151   :  { %1989 = vmatpush.msrb.mxu1 %v1988_v43  ;;  %2074 = vmatpush.msrb.mxu3 %v3807_v9 }
 0x152   :  { %1878 = vmatpush.msrb.mxu0 %v3807_v9  ;;  %v1019_v23 = vpop.f32.mrf.mxu0  ;;  %2039 = vmatpush.msrb.mxu2 %v3853_v30 }
 0x153   :  { %2158 = vmatpush.msra.mxu1 %v3664_v53  ;;  %v1020_v2 = vadd.f32 %v1019_v23, %v966_v36  ;;  %2076 = vmatpush.msrb.mxu3 %v3820_v8  ;;  %v1127_v53 = vpop.f32.mrf.mxu2 }
 0x154   :  { %1880 = vmatpush.msrb.mxu0 %v3820_v8  ;;  %2042 = vmatpush.msrb.mxu2 %v3863_v15 }
 0x155   :  { %2160 = vmatpush.msra.mxu1 %v3671_v46  ;;  %v1059_v61 = vadd.f32 %v1058_v17, %v1020_v2  ;;  %2078 = vmatpush.msrb.mxu3 %v3831_v52  ;;  %v1164_v46 = vpop.f32.mrf.mxu3 }
 0x156   :  { %1882 = vmatpush.msrb.mxu0 %v3831_v52 }
 0x157   :  { %2162 = vmatpush.msra.mxu1 %v3681_v5  ;;  %v1128_v7 = vadd.f32 %v1127_v53, %v1059_v61  ;;  %2080 = vmatpush.msrb.mxu3 %v3843_v12 }
 0x158   :  { %1884 = vmatpush.msrb.mxu0 %v3843_v12 }
 0x159   :  { %2164 = vmatpush.msra.mxu1 %v3691_v14  ;;  %v1165_v39 = vadd.f32 %v1164_v46, %v1128_v7 }
 0x15a   :  { %2091 = vmatpush.msra.mxu0 %v1896_v0 }
 0x15b   :  { %2166 = vmatpush.msra.mxu1 %v3702_v50  ;;  %v1849_v55 = vmax.f32 %v1165_v39, 0.0  ;;  %v3942_v50 = vand.u32 4294901760, %v477_v27 }
 0x15c   :  { %2095 = vmatpush.msra.mxu0 %v1902_v11 }
 0x15d   :  { %2168 = vmatpush.msra.mxu1 %v3713_v37  ;;  %v1851_v5 = vmin.f32 %v1849_v55, 6.0  ;;  %v3948_v37 = vsub.f32 %v477_v27, %v3942_v50  ;;  %2195 = vmatpush.msra.mxu2 %v3942_v50  ;;  %v466_v55 = vld [vmem:[#allocation2 + $0x360] sm:$0xff]  ;;  %v465_v27 = vld [vmem:[#allocation2 + $0x350] sm:$0xff] }
 0x15e   :  { %2099 = vmatpush.msra.mxu0 %v1908_v45  ;;  %v475_v45 = vld [vmem:[#allocation2 + $0x3f0] sm:$0xff] }
 0x15f   :  { %2170 = vmatpush.msra.mxu1 %v3717_v20  ;;  %v3926_v14 = vand.u32 4294901760, %v1851_v5  ;;  %v3950_v20 = vand.u32 4294901760, %v476_v25  ;;  %v2237_v41 = vand.u32 4294901760, %v3948_v37 }
 0x160   :  { %2103 = vmatpush.msra.mxu0 %v1914_v40  ;;  %v3960_v40 = vand.u32 4294901760, %v475_v45 }
 0x161   :  { %2172 = vmatpush.msra.mxu1 %v3731_v62  ;;  %v1886_v31 = vsub.f32 %v1851_v5, %v3926_v14  ;;  %v3958_v62 = vsub.f32 %v476_v25, %v3950_v20  ;;  %2197 = vmatpush.msra.mxu2 %v3950_v20  ;;  %v2238_v38 = vsub.f32 %v3948_v37, %v2237_v41  ;;  %v463_v25 = vld [vmem:[#allocation2 + $0x330] sm:$0xff] }
 0x162   :  { %2107 = vmatpush.msra.mxu0 %v1920_v57  ;;  %1991 = vmatmul.f32.vlgmr.msrb.gmra.mxu1 %v3926_v14  ;;  %v3971_v57 = vsub.f32 %v475_v45, %v3960_v40 }
 0x163   :  { %2174 = vmatpush.msra.mxu1 %v3748_v56  ;;  %2045 = vmatmul.f32.vlgmr.msrb.gmra.mxu2 %v1886_v31  ;;  %v1887_v6 = vand.u32 4294901760, %v1886_v31  ;;  %v2243_v56 = vand.u32 4294901760, %v3958_v62 }
 0x164   :  { %2111 = vmatpush.msra.mxu0 %v1926_v32  ;;  %v473_v32 = vld [vmem:[#allocation2 + $0x3d0] sm:$0xff]  ;;  %2199 = vmatpush.msra.mxu2 %v3960_v40  ;;  %v2249_v16 = vand.u32 4294901760, %v3971_v57 }
 0x165   :  { %2176 = vmatpush.msra.mxu1 %v3771_v19  ;;  %2084 = vmatmul.f32.vlgmr.msrb.gmra.mxu3 %v1887_v6  ;;  %v1888_v0 = vsub.f32 %v1886_v31, %v1887_v6  ;;  %v2239_v19 = vand.u32 4294901760, %v2238_v38  ;;  %v4073_v6 = vand.u32 4294901760, %v466_v55 }
 0x166   :  { %2115 = vmatpush.msra.mxu0 %v1932_v54  ;;  %v2244_v54 = vsub.f32 %v3958_v62, %v2243_v56  ;;  %2201 = vmatpush.msra.mxu2 %v3973_v58 }
 0x167   :  { %2178 = vmatpush.msra.mxu1 %v3784_v44  ;;  %v1889_v11 = vand.u32 4294901760, %v1888_v0  ;;  %v3984_v44 = vsub.f32 %v474_v63, %v3973_v58  ;;  %2240 = vmatpush.msra.mxu3 %v2239_v19  ;;  %v4081_v38 = vsub.f32 %v466_v55, %v4073_v6  ;;  %v462_v19 = vld [vmem:[#allocation2 + $0x320] sm:$0xff] }
 0x168   :  { %2119 = vmatpush.msra.mxu0 %v1938_v13  ;;  %v3988_v13 = vand.u32 4294901760, %v473_v32 }
 0x169   :  { %2180 = vmatpush.msra.mxu1 %v3796_v29  ;;  %1890 = vmatmul.f32.vlgmr.msrb.gmra.mxu0 %v1889_v11  ;;  %v2245_v29 = vand.u32 4294901760, %v2244_v54  ;;  %v2255_v33 = vand.u32 4294901760, %v3984_v44  ;;  %v464_v11 = vld [vmem:[#allocation2 + $0x340] sm:$0xff] }
 0x16a   :  { %2123 = vmatpush.msra.mxu0 %v1944_v51  ;;  %v2250_v51 = vsub.f32 %v3971_v57, %v2249_v16  ;;  %2203 = vmatpush.msra.mxu2 %v3988_v13 }
 0x16b   :  { %2182 = vmatpush.msra.mxu1 %v3807_v9  ;;  %v3996_v9 = vand.u32 4294901760, %v472_v4  ;;  %2246 = vmatpush.msra.mxu3 %v2245_v29  ;;  %v4092_v29 = vand.u32 4294901760, %v463_v25 }
 0x16c   :  { %2127 = vmatpush.msra.mxu0 %v1950_v1  ;;  %v4002_v1 = vsub.f32 %v473_v32, %v3988_v13  ;;  %v4083_v32 = vand.u32 4294901760, %v465_v27 }
 0x16d   :  { %2184 = vmatpush.msra.mxu1 %v3820_v8  ;;  %v2251_v8 = vand.u32 4294901760, %v2250_v51  ;;  %2205 = vmatpush.msra.mxu2 %v3996_v9  ;;  %v4094_v51 = vand.u32 4294901760, %v462_v19 }
 0x16e   :  { %2131 = vmatpush.msra.mxu0 %v1956_v47  ;;  %v2256_v47 = vsub.f32 %v3984_v44, %v2255_v33  ;;  %v2261_v22 = vand.u32 4294901760, %v4002_v1 }
 0x16f   :  { %2186 = vmatpush.msra.mxu1 %v3831_v52  ;;  %v4008_v52 = vsub.f32 %v472_v4, %v3996_v9  ;;  %2252 = vmatpush.msra.mxu3 %v2251_v8  ;;  %v4090_v4 = vand.u32 4294901760, %v464_v11  ;;  %v2303_v8 = vand.u32 4294901760, %v4081_v38 }
 0x170   :  { %2135 = vmatpush.msra.mxu0 %v1962_v3  ;;  %v4010_v3 = vand.u32 4294901760, %v471_v42  ;;  %v2262_v48 = vsub.f32 %v4002_v1, %v2261_v22 }
 0x171   :  { %2188 = vmatpush.msra.mxu1 %v3843_v12  ;;  %v470_v12 = vld [vmem:[#allocation2 + $0x3a0] sm:$0xff]  ;;  %v2267_v18 = vand.u32 4294901760, %v4008_v52 }
 0x172   :  { %2190 = vmatmul.f32.vlgmr.msra.gmra.mxu1 %v3926_v14  ;;  %2139 = vmatpush.msra.mxu0 %v1968_v24  ;;  %v2257_v24 = vand.u32 4294901760, %v2256_v47  ;;  %v4019_v28 = vsub.f32 %v471_v42, %v4010_v3  ;;  %v4021_v34 = vand.u32 4294901760, %v470_v12  ;;  %v2263_v30 = vand.u32 4294901760, %v2262_v48 }
 0x173   :  { %2391 = vmatpush.msrb.mxu1 %v3942_v50  ;;  %v2268_v60 = vsub.f32 %v4008_v52, %v2267_v18  ;;  %2207 = vmatpush.msra.mxu2 %v4010_v3  ;;  %v4102_v47 = vsub.f32 %v465_v27, %v4083_v32  ;;  %v4110_v48 = vsub.f32 %v463_v25, %v4092_v29 }
 0x174   :  { %2143 = vmatpush.msra.mxu0 %v1974_v21  ;;  %v469_v21 = vld [vmem:[#allocation2 + $0x390] sm:$0xff]  ;;  %2258 = vmatpush.msra.mxu3 %v2257_v24  ;;  %v2273_v26 = vand.u32 4294901760, %v4019_v28  ;;  %v4035_v43 = vsub.f32 %v470_v12, %v4021_v34  ;;  %v4107_v24 = vsub.f32 %v464_v11, %v4090_v4 }
 0x175   :  { %2393 = vmatpush.msrb.mxu1 %v3950_v20  ;;  %v4037_v10 = vand.u32 4294901760, %v469_v21  ;;  %v2269_v36 = vand.u32 4294901760, %v2268_v60  ;;  %2209 = vmatpush.msra.mxu2 %v4021_v34 }
 0x176   :  { %2147 = vmatpush.msra.mxu0 %v1980_v35  ;;  %v468_v35 = vld [vmem:[#allocation2 + $0x380] sm:$0xff]  ;;  %v2274_v23 = vsub.f32 %v4019_v28, %v2273_v26  ;;  %v2279_v2 = vand.u32 4294901760, %v4035_v43  ;;  %2264 = vmatpush.msra.mxu3 %v2263_v30  ;;  %v2304_v30 = vsub.f32 %v4081_v38, %v2303_v8 }
 0x177   :  { %2395 = vmatpush.msrb.mxu1 %v3960_v40  ;;  %v4049_v17 = vsub.f32 %v469_v21, %v4037_v10  ;;  %v4052_v15 = vand.u32 4294901760, %v468_v35  ;;  %2211 = vmatpush.msra.mxu2 %v4037_v10  ;;  %v4113_v21 = vsub.f32 %v462_v19, %v4094_v51 }
 0x178   :  { %2151 = vmatpush.msra.mxu0 %v1986_v49  ;;  %v467_v49 = vld [vmem:[#allocation2 + $0x370] sm:$0xff]  ;;  %v2275_v61 = vand.u32 4294901760, %v2274_v23  ;;  %v2280_v53 = vsub.f32 %v4035_v43, %v2279_v2  ;;  %2270 = vmatpush.msra.mxu3 %v2269_v36  ;;  %v2315_v36 = vand.u32 4294901760, %v4107_v24  ;;  %v2321_v23 = vand.u32 4294901760, %v4110_v48 }
 0x179   :  { %2153 = vmatmul.f32.vlgmr.msra.gmra.mxu0 %v3926_v14  ;;  %v2285_v7 = vand.u32 4294901760, %v4049_v17  ;;  %v4059_v46 = vand.u32 4294901760, %v467_v49  ;;  %2397 = vmatpush.msrb.mxu1 %v3973_v58  ;;  %v4064_v39 = vsub.f32 %v468_v35, %v4052_v15  ;;  %v2309_v35 = vand.u32 4294901760, %v4102_v47 }
 0x17a   :  { %2338 = vmatpush.msrb.mxu0 %v3948_v37  ;;  %v2281_v5 = vand.u32 4294901760, %v2280_v53  ;;  %2213 = vmatpush.msra.mxu2 %v4052_v15  ;;  %v2316_v55 = vsub.f32 %v4107_v24, %v2315_v36  ;;  %v1205_v37 = vpop.f32.mrf.mxu0 }
 0x17b   :  { %v2286_v14 = vsub.f32 %v4049_v17, %v2285_v7  ;;  %v4071_v31 = vsub.f32 %v467_v49, %v4059_v46  ;;  %2399 = vmatpush.msrb.mxu1 %v3988_v13  ;;  %2276 = vmatpush.msra.mxu3 %v2275_v61  ;;  %v2291_v0 = vand.u32 4294901760, %v4064_v39  ;;  %v2327_v49 = vand.u32 4294901760, %v4113_v21 }
 0x17c   :  { %2341 = vmatpush.msrb.mxu0 %v3958_v62  ;;  %2215 = vmatpush.msra.mxu2 %v4059_v46  ;;  %v2305_v61 = vand.u32 4294901760, %v2304_v30  ;;  %v2310_v53 = vsub.f32 %v4102_v47, %v2309_v35  ;;  %v2317_v27 = vand.u32 4294901760, %v2316_v55  ;;  %v1360_v62 = vpop.f32.mrf.mxu2 }
 0x17d   :  { %v2287_v45 = vand.u32 4294901760, %v2286_v14  ;;  %v2297_v63 = vand.u32 4294901760, %v4071_v31  ;;  %2401 = vmatpush.msrb.mxu1 %v3996_v9  ;;  %2282 = vmatpush.msra.mxu3 %v2281_v5  ;;  %v2292_v54 = vsub.f32 %v4064_v39, %v2291_v0  ;;  %v2322_v5 = vsub.f32 %v4110_v48, %v2321_v23 }
 0x17e   :  { %2344 = vmatpush.msrb.mxu0 %v3971_v57  ;;  %2217 = vmatpush.msra.mxu2 %v4073_v6  ;;  %v2311_v14 = vand.u32 4294901760, %v2310_v53  ;;  %v2328_v11 = vsub.f32 %v4113_v21, %v2327_v49 }
 0x17f   :  { %v2298_v42 = vsub.f32 %v4071_v31, %v2297_v63  ;;  %2403 = vmatpush.msrb.mxu1 %v4010_v3  ;;  %2288 = vmatpush.msra.mxu3 %v2287_v45  ;;  %v2293_v12 = vand.u32 4294901760, %v2292_v54  ;;  %v2323_v25 = vand.u32 4294901760, %v2322_v5 }
 0x180   :  { %2347 = vmatpush.msrb.mxu0 %v3984_v44  ;;  %2219 = vmatpush.msra.mxu2 %v4083_v32  ;;  %v2329_v45 = vand.u32 4294901760, %v2328_v11 }
 0x181   :  { %v2299_v60 = vand.u32 4294901760, %v2298_v42  ;;  %2405 = vmatpush.msrb.mxu1 %v4021_v34  ;;  %2294 = vmatpush.msra.mxu3 %v2293_v12 }
 0x182   :  { %2350 = vmatpush.msrb.mxu0 %v4002_v1  ;;  %2221 = vmatpush.msra.mxu2 %v4090_v4 }
 0x183   :  { %2407 = vmatpush.msrb.mxu1 %v4037_v10  ;;  %2300 = vmatpush.msra.mxu3 %v2299_v60 }
 0x184   :  { %2353 = vmatpush.msrb.mxu0 %v4008_v52  ;;  %2223 = vmatpush.msra.mxu2 %v4092_v29 }
 0x185   :  { %2409 = vmatpush.msrb.mxu1 %v4052_v15  ;;  %2306 = vmatpush.msra.mxu3 %v2305_v61 }
 0x186   :  { %2356 = vmatpush.msrb.mxu0 %v4019_v28  ;;  %2225 = vmatpush.msra.mxu2 %v4094_v51 }
 0x187   :  { %2411 = vmatpush.msrb.mxu1 %v4059_v46  ;;  %2312 = vmatpush.msra.mxu3 %v2311_v14 }
 0x188   :  { %2359 = vmatpush.msrb.mxu0 %v4035_v43  ;;  %2432 = vmatpush.msrb.mxu2 %v2237_v41 }
 0x189   :  { %2413 = vmatpush.msrb.mxu1 %v4073_v6  ;;  %2318 = vmatpush.msra.mxu3 %v2317_v27 }
 0x18a   :  { %2362 = vmatpush.msrb.mxu0 %v4049_v17  ;;  %2436 = vmatpush.msrb.mxu2 %v2243_v56  ;;  %v1399_v56 = vpop.f32.mrf.mxu3 }
 0x18b   :  { %2415 = vmatpush.msrb.mxu1 %v4083_v32  ;;  %2324 = vmatpush.msra.mxu3 %v2323_v25 }
 0x18c   :  { %2365 = vmatpush.msrb.mxu0 %v4064_v39  ;;  %2440 = vmatpush.msrb.mxu2 %v2249_v16 }
 0x18d   :  { %2417 = vmatpush.msrb.mxu1 %v4090_v4  ;;  %2330 = vmatpush.msra.mxu3 %v2329_v45  ;;  %v2535_v45 = vlaneseq }
 0x18e   :  { %2368 = vmatpush.msrb.mxu0 %v4071_v31  ;;  %2444 = vmatpush.msrb.mxu2 %v2255_v33 }
 0x18f   :  { %2499 = vmatpush.msrb.mxu3 %v3942_v50  ;;  %2419 = vmatpush.msrb.mxu1 %v4092_v29  ;;  %v482_v50 = vperm.slane %v3759_v59, 1  ;;  %v1306_v59 = vpop.f32.mrf.mxu1 }
 0x190   :  { %2371 = vmatpush.msrb.mxu0 %v4081_v38  ;;  %2448 = vmatpush.msrb.mxu2 %v2261_v22 }
 0x191   :  { %2501 = vmatpush.msrb.mxu3 %v3950_v20  ;;  %2421 = vmatpush.msrb.mxu1 %v4094_v51  ;;  %v1206_v20 = vadd.f32 %v1205_v37, %v482_v50 }
 0x192   :  { %2374 = vmatpush.msrb.mxu0 %v4102_v47  ;;  %2452 = vmatpush.msrb.mxu2 %v2267_v18 }
 0x193   :  { %2503 = vmatpush.msrb.mxu3 %v3960_v40  ;;  %v1307_v41 = vadd.f32 %v1306_v59, %v1206_v20  ;;  %v2536_v59 = vand.u32 127, %v2535_v45 }
 0x194   :  { %2377 = vmatpush.msrb.mxu0 %v4107_v24  ;;  %2456 = vmatpush.msrb.mxu2 %v2273_v26  ;;  %v1546_v33 = vpop.f32.mrf.mxu2 }
 0x195   :  { %2505 = vmatpush.msrb.mxu3 %v3973_v58  ;;  %v1361_v40 = vadd.f32 %v1360_v62, %v1307_v41  ;;  %vm2556_vm2 = vcmp.lt.s32.totalorder %v2536_v59, 8  ;;  %vm2555_vm3 = vcmp.lt.s32.totalorder %v2536_v59, 4 }
 0x196   :  { %2380 = vmatpush.msrb.mxu0 %v4110_v48  ;;  %2460 = vmatpush.msrb.mxu2 %v2279_v2  ;;  %v1468_v57 = vpop.f32.mrf.mxu0 }
 0x197   :  { %2507 = vmatpush.msrb.mxu3 %v3988_v13  ;;  %v1400_v58 = vadd.f32 %v1399_v56, %v1361_v40  ;;  %v1505_v44 = vpop.f32.mrf.mxu1  ;;  %v1647_v1 = vpop.f32.mrf.mxu3 }
 0x198   :  { %2383 = vmatpush.msrb.mxu0 %v4113_v21  ;;  %2464 = vmatpush.msrb.mxu2 %v2285_v7 }
 0x199   :  { %2509 = vmatpush.msrb.mxu3 %v3996_v9  ;;  %v1469_v16 = vadd.f32 %v1468_v57, %v1400_v58 }
 0x19a   :  { %2468 = vmatpush.msrb.mxu2 %v2291_v0 }
 0x19b   :  { %2511 = vmatpush.msrb.mxu3 %v4010_v3  ;;  %v1506_v13 = vadd.f32 %v1505_v44, %v1469_v16 }
 0x19c   :  { %2472 = vmatpush.msrb.mxu2 %v2297_v63 }
 0x19d   :  { %2513 = vmatpush.msrb.mxu3 %v4021_v34  ;;  %v1547_v9 = vadd.f32 %v1546_v33, %v1506_v13 }
 0x19e   :  { %2476 = vmatpush.msrb.mxu2 %v2303_v8 }
 0x19f   :  { %2515 = vmatpush.msrb.mxu3 %v4037_v10  ;;  %v1648_v52 = vadd.f32 %v1647_v1, %v1547_v9 }
 0x1a0   :  { %2480 = vmatpush.msrb.mxu2 %v2309_v35 }
 0x1a1   :  { %2517 = vmatpush.msrb.mxu3 %v4052_v15 }
 0x1a2   :  { %2484 = vmatpush.msrb.mxu2 %v2315_v36 }
 0x1a3   :  { %2519 = vmatpush.msrb.mxu3 %v4059_v46 }
 0x1a4   :  { %2488 = vmatpush.msrb.mxu2 %v2321_v23 }
 0x1a5   :  { %2521 = vmatpush.msrb.mxu3 %v4073_v6  ;;  %v50_v6 = vld [vmem:[#allocation4 + $0x2] ss:$0 sm:$0xff] }
 0x1a6   :  { %2492 = vmatpush.msrb.mxu2 %v2327_v49 }
 0x1a7   :  { %2523 = vmatpush.msrb.mxu3 %v4083_v32 }
 0x1a9   :  { %2525 = vmatpush.msrb.mxu3 %v4090_v4 }
 0x1ab   :  { %2527 = vmatpush.msrb.mxu3 %v4092_v29 }
 0x1ad   :  { %2529 = vmatpush.msrb.mxu3 %v4094_v51 }
 0x1ae   :  { %v1740_v18 = vpop.f32.mrf.mxu1 }
 0x1b6   :  { %v1701_v3 = vpop.f32.mrf.mxu0  ;;  %v1809_v34 = vpop.f32.mrf.mxu2 }
 0x1b7   :  { %v1702_v22 = vadd.f32 %v1701_v3, %v1648_v52 }
 0x1b8   :  { %v1846_v43 = vpop.f32.mrf.mxu3 }
 0x1b9   :  { %v1741_v28 = vadd.f32 %v1740_v18, %v1702_v22 }
 0x1bb   :  { %v1810_v26 = vadd.f32 %v1809_v34, %v1741_v28 }
 0x1bd   :  { %v1847_v10 = vadd.f32 %v1846_v43, %v1810_v26 }
 0x1bf   :  { %v1850_v2 = vmax.f32 %v1847_v10, 0.0 }
 0x1c1   :  { %v1852_v17 = vmin.f32 %v1850_v2, 6.0 }
 0x1c3   :  { %v2226_v15 = vand.u32 4294901760, %v1852_v17 }
 0x1c5   :  { %v2227_v7 = vsub.f32 %v1852_v17, %v2226_v15  ;;  %2332 = vmatmul.f32.vlgmr.msra.gmra.mxu3 %v2226_v15 }
 0x1c7   :  { %2386 = vmatmul.f32.vlgmr.msrb.gmra.mxu0 %v2227_v7  ;;  %v2228_v46 = vand.u32 4294901760, %v2227_v7 }
 0x1c9   :  { %2425 = vmatmul.f32.vlgmr.msrb.gmra.mxu1 %v2228_v46  ;;  %v2229_v39 = vsub.f32 %v2227_v7, %v2228_v46 }
 0x1cb   :  { %v2230_v31 = vand.u32 4294901760, %v2229_v39 }
 0x1cd   :  { %2231 = vmatmul.f32.vlgmr.msra.gmra.mxu2 %v2230_v31  ;;  %2531 = vmatmul.f32.vlgmr.msrb.gmra.mxu3 %v2226_v15 }
 0x1d5   :  { %2494 = vmatmul.f32.vlgmr.msrb.gmra.mxu2 %v2226_v15 }
 0x1df   :  { %v1992_v38 = vpop.f32.mrf.mxu1 }
 0x1e6   :  { %v1891_v0 = vpop.f32.mrf.mxu0  ;;  %v2046_v19 = vpop.f32.mrf.mxu2 }
 0x1e7   :  { %v1892_v63 = vadd.f32 %v1891_v0, %v50_v6 }
 0x1e8   :  { %v2085_v4 = vpop.f32.mrf.mxu3 }
 0x1e9   :  { %v1993_v32 = vadd.f32 %v1992_v38, %v1892_v63 }
 0x1eb   :  { %v2047_v54 = vadd.f32 %v2046_v19, %v1993_v32 }
 0x1ed   :  { %v2086_v29 = vadd.f32 %v2085_v4, %v2047_v54 }
 0x1ef   :  { %v2191_v8 = vpop.f32.mrf.mxu1 }
 0x1f6   :  { %v2154_v51 = vpop.f32.mrf.mxu0 }
 0x1f7   :  { %v2155_v42 = vadd.f32 %v2154_v51, %v2086_v29 }
 0x1f9   :  { %v2192_v47 = vadd.f32 %v2191_v8, %v2155_v42 }
 0x244   :  { %v2387_v60 = vpop.f32.mrf.mxu0 }
 0x246   :  { %v2426_v35 = vpop.f32.mrf.mxu1 }
 0x248   :  { %v2333_v12 = vpop.f32.mrf.mxu3 }
 0x250   :  { %v2232_v24 = vpop.f32.mrf.mxu2  ;;  %v2532_v61 = vpop.f32.mrf.mxu3 }
 0x251   :  { %v2233_v48 = vadd.f32 %v2232_v24, %v2192_v47 }
 0x253   :  { %v2334_v21 = vadd.f32 %v2333_v12, %v2233_v48 }
 0x255   :  { %v2388_v30 = vadd.f32 %v2387_v60, %v2334_v21 }
 0x257   :  { %v2427_v36 = vadd.f32 %v2426_v35, %v2388_v30 }
 0x258   :  { %v2495_v23 = vpop.f32.mrf.mxu2 }
 0x259   :  { %v2496_v49 = vadd.f32 %v2495_v23, %v2427_v36 }
 0x25b   :  { %v2533_v53 = vadd.f32 %v2532_v61, %v2496_v49 }
 0x25d   :  { %v2539_v55 = vand.u32 2147483647, %v2533_v53  ;;  %v2552_v40 = vmax.f32 %v2533_v53, 0.0 }
 0x25f   :  { %v2540_v5 = vsub.f32 0.0, %v2539_v55 }
 0x261   :  { %v2541_v14 = vmul.f32 1.442695, %v2540_v5 }
 0x263   :  { %2570 = vpow2.f32 %v2541_v14 }
 0x269   :  { %v2571_v27 = vpop.eup %2570 }
 0x26a   :  { %v2543_v11 = vadd.f32 1.0, %v2571_v27  ;;  %v2546_v25 = vmul.f32 -0.5, %v2571_v27  ;;  %v2549_v37 = vand.u32 2147483647, %v2571_v27 }
 0x26c   :  { %2572 = vlog2.f32 %v2543_v11  ;;  %v2547_v50 = vadd.f32 1.0, %v2546_v25  ;;  %vm2550_vm1 = vcmp.lt.f32.partialorder %v2549_v37, 0.0004427343 }
 0x26d   :  { %2574 = vtanh.f32 %v2533_v53 }
 0x26e   :  { %v2548_v62 = vmul.f32 %v2571_v27, %v2547_v50 }
 0x272   :  { %v2573_v20 = vpop.eup %2572 }
 0x273   :  { %v2545_v41 = vmul.f32 0.6931472, %v2573_v20  ;;  %v2575_v57 = vpop.eup %2574 }
 0x274   :  { %v2538_v44 = vmul.f32 5.0, %v2575_v57 }
 0x275   :  { %v2551_v56 = vsel %vm2550_vm1, %v2548_v62, %v2545_v41 }
 0x276   :  { %v2553_v58 = vadd.f32 %v2552_v40, %v2551_v56 }
 0x278   :  { %v2554_v16 = vadd.f32 0.001, %v2553_v58 }
 0x27a   :  { %v2557_v13 = vsel %vm2556_vm2, %v2554_v16, %v2533_v53 }
 0x27b   :  { %v2558_v33 = vsel %vm2555_vm3, %v2538_v44, %v2557_v13 }
 0x27c   :  { %2559 = vst [vmem:[%s4214_s3] sm:$0xff] %v2558_v33 }
 0x27d   :  { %2564 = vsyncpa [#allocation3], 1 }
 0x27e   :  { %2565 = vsyncpa [#allocation5], 1 }

</bundles_post_ra>
